<compile_context>
chip_gen: v6e
topology: v6e:2x2x1
jax: 0.10.0
libtpu: 0.0.40
codegen_flags: <defaults>
</compile_context>

<pallas_src>
import functools

import jax
import jax.numpy as jnp
from jax.experimental import pallas as pl
from jax.experimental.pallas import tpu as pltpu

LANE = 128
ROW_PACK = 16  # bf16 packs two rows per sublane


def _round_up(x, m):
    return (x + m - 1) // m * m


# ---------------------------------------------------------------------------
# in-kernel helper: one-pass LayerNorm (sum + sum-of-squares)
# ---------------------------------------------------------------------------
def _layernorm(x, gamma, beta, true_n, eps=1e-5):
    inv_n = 1.0 / float(true_n)
    s = jnp.sum(x, axis=-1, keepdims=True)
    ss = jnp.sum(x * x, axis=-1, keepdims=True)
    mu = s * inv_n
    var = ss * inv_n - mu * mu
    return (x - mu) * jax.lax.rsqrt(var + eps) * gamma + beta


# ---------------------------------------------------------------------------
# Pallas kernel: one batch tile of the whole MLP
# ---------------------------------------------------------------------------
def balanced_mlp_kernel(x_ref, w0_ref, w1_ref, w2_ref, w3_ref, small_ref, out_ref,
                        *, ln1_n, ln2_n):
    h1p = w1_ref.shape[1]   # 256 (192 zero-padded)
    h2p = w2_ref.shape[1]   # 128 (96 zero-padded)
    ncp = w3_ref.shape[1]   # 128 (num_classes zero-padded)

    # Packed small params (one DMA): rows = b0, ln1_g, ln1_b, b1, ln2_g, ln2_b, b2, b3
    sp = small_ref[...]                 # (8, 256) f32
    b0 = sp[0:1, :]
    g1 = sp[1:2, :]
    be1 = sp[2:3, :]
    b1 = sp[3:4, :h1p]
    g2 = sp[4:5, :h1p]
    be2 = sp[5:6, :h1p]
    b2 = sp[6:7, :h2p]
    b3 = sp[7:8, :ncp]

    xv = x_ref[...]                     # f32 tile; (B, D) or (B, S, D)
    if xv.ndim == 3:
        # fused `x = x.mean(dim=1)` from the module, kept in f32
        xv = jnp.mean(xv, axis=1)
    x = xv.astype(jnp.bfloat16)         # in-kernel cast, free under the MXU

    # input_proj: Linear(input_dim -> 256)
    h = jnp.dot(x, w0_ref[...], preferred_element_type=jnp.float32) + b0
    # LayerNorm(256) -> ReLU
    h = jnp.maximum(_layernorm(h, g1, be1, ln1_n), 0.0)
    # TODO(synk): nn.Dropout treated as identity (eval/inference mode).

    # Linear(256 -> 192) padded to 256 lanes -> LayerNorm(192, true width) -> ReLU
    h = jnp.dot(h.astype(jnp.bfloat16), w1_ref[...],
                preferred_element_type=jnp.float32) + b1
    # padded lanes are exactly 0 into the stats and gamma/beta are 0 there,
    # so they stay 0 going into the next matmul.
    h = jnp.maximum(_layernorm(h, g2, be2, ln2_n), 0.0)

    # Linear(192 -> 96) zero-padded to (256, 128) -> ReLU
    h = jnp.dot(h.astype(jnp.bfloat16), w2_ref[...],
                preferred_element_type=jnp.float32) + b2
    h = jnp.maximum(h, 0.0)

    # Linear(96 -> num_classes), padded to (128, 128) -> lane-dense bf16 store
    out = jnp.dot(h.astype(jnp.bfloat16), w3_ref[...],
                  preferred_element_type=jnp.float32) + b3
    out_ref[...] = out.astype(out_ref.dtype)


# ---------------------------------------------------------------------------
# parameter packing (wrapper side)
# ---------------------------------------------------------------------------
def _prepare_params(p, num_classes):
    h0 = p["b0"].shape[0]                         # 256
    h1 = p["b1"].shape[0]                         # 192
    h2 = p["b2"].shape[0]                         # 96
    h1p = _round_up(h1, LANE)                     # 256
    h2p = _round_up(h2, LANE)                     # 128
    ncp = _round_up(max(num_classes, 1), LANE)    # 128

    w0 = p["w0"].astype(jnp.bfloat16)                                   # (in, 256)
    w1 = (jnp.zeros((h0, h1p), jnp.float32)
          .at[:, :h1].set(p["w1"])).astype(jnp.bfloat16)                # (256, 256)
    w2 = (jnp.zeros((h1p, h2p), jnp.float32)
          .at[:h1, :h2].set(p["w2"])).astype(jnp.bfloat16)              # (256, 128)
    w3 = (jnp.zeros((h2p, ncp), jnp.float32)
          .at[:h2, :num_classes].set(p["w3"])).astype(jnp.bfloat16)     # (128, 128)

    width = max(h0, h1p, LANE)                    # 256

    def row(v):
        return jnp.zeros((width,), jnp.float32).at[: v.shape[0]].set(v)

    small = jnp.stack(
        [row(p["b0"]), row(p["ln1_g"]), row(p["ln1_b"]),
         row(p["b1"]), row(p["ln2_g"]), row(p["ln2_b"]),
         row(p["b2"]), row(p["b3"])],
        axis=0,
    )                                             # (8, 256) f32 — one small DMA
    return w0, w1, w2, w3, small, ncp, h0, h1


# ---------------------------------------------------------------------------
# batch-tile selection
# ---------------------------------------------------------------------------
def _pick_block_b(padded_b, row_bytes):
    # Keep one f32 x buffer <= ~5 MiB so double-buffered tiles fit v5e's
    # 16 MiB default scoped VMEM without needing vmem_limit_bytes.
    cap = max(ROW_PACK, ((5 * 1024 * 1024) // row_bytes) // ROW_PACK * ROW_PACK)
    block_b = min(512, cap, padded_b)
    # Guarantee >= 2 grid steps on larger batches so both v7x TensorCores get work.
    if padded_b >= 2 * ROW_PACK:
        half = _round_up((padded_b + 1) // 2, ROW_PACK)
        block_b = min(block_b, half)
    return max(ROW_PACK, (block_b // ROW_PACK) * ROW_PACK)


# ---------------------------------------------------------------------------
# wrapper
# ---------------------------------------------------------------------------
def balanced_mlp(x, params, num_classes=2, lengths=None):
    del lengths  # unused, as in the PyTorch module
    is_3d = (x.ndim == 3)
    if is_3d:
        batch, seq, in_dim = x.shape
        row_bytes = seq * in_dim * 4
    else:
        batch, in_dim = x.shape
        row_bytes = in_dim * 4

    w0, w1, w2, w3, small, ncp, h0, h1 = _prepare_params(params, num_classes)

    # x stays f32; only pad the batch up to a multiple of 16 (bf16 row pack).
    padded_b = _round_up(batch, ROW_PACK)
    xf = x.astype(jnp.float32)
    if padded_b != batch:
        pad = [(0, padded_b - batch)] + [(0, 0)] * (x.ndim - 1)
        xf = jnp.pad(xf, pad)

    block_b = _pick_block_b(padded_b, row_bytes)
    grid = (pl.cdiv(padded_b, block_b),)   # ragged last tile handled by Pallas

    if is_3d:
        x_spec = pl.BlockSpec((block_b, seq, in_dim), lambda i: (i, 0, 0))
    else:
        x_spec = pl.BlockSpec((block_b, in_dim), lambda i: (i, 0))

    const = lambda i: (0, 0)
    kernel = functools.partial(balanced_mlp_kernel,
                               ln1_n=float(h0), ln2_n=float(h1))

    out = pl.pallas_call(
        kernel,
        out_shape=jax.ShapeDtypeStruct((padded_b, ncp), jnp.bfloat16),
        grid=grid,
        in_specs=[
            x_spec,
            pl.BlockSpec(w0.shape, const),
            pl.BlockSpec(w1.shape, const),
            pl.BlockSpec(w2.shape, const),
            pl.BlockSpec(w3.shape, const),
            pl.BlockSpec(small.shape, const),
        ],
        out_specs=pl.BlockSpec((block_b, ncp), lambda i: (i, 0)),
        compiler_params=pltpu.CompilerParams(dimension_semantics=("parallel",)),
    )(xf, w0, w1, w2, w3, small)

    return out[:batch, :num_classes].astype(jnp.float32)


# ---------------------------------------------------------------------------
# deterministic synthetic parameters (PyTorch-like shapes, stored as (in, out))
# ---------------------------------------------------------------------------
def make_params(key, input_dim=1280, num_classes=2):
    ks = jax.random.split(key, 12)

    def lin(k, d_in, d_out):
        return jax.random.normal(k, (d_in, d_out), jnp.float32) / jnp.sqrt(d_in)

    def b(k, d):
        return 0.02 * jax.random.normal(k, (d,), jnp.float32)

    return {
        "w0": lin(ks[0], input_dim, 256), "b0": b(ks[1], 256),
        "ln1_g": 1.0 + 0.05 * jax.random.normal(ks[2], (256,), jnp.float32),
        "ln1_b": 0.05 * jax.random.normal(ks[3], (256,), jnp.float32),
        "w1": lin(ks[4], 256, 192), "b1": b(ks[5], 192),
        "ln2_g": 1.0 + 0.05 * jax.random.normal(ks[6], (192,), jnp.float32),
        "ln2_b": 0.05 * jax.random.normal(ks[7], (192,), jnp.float32),
        "w2": lin(ks[8], 192, 96), "b2": b(ks[9], 96),
        "w3": lin(ks[10], 96, num_classes), "b3": b(ks[11], num_classes),
    }


# ---------------------------------------------------------------------------
# pure-JAX f32 reference (mirrors the PyTorch forward, eval mode)
# ---------------------------------------------------------------------------
def reference_forward(x, p):
    if x.ndim == 3:
        x = jnp.mean(x, axis=1)

    def ln(v, g, beta):
        mu = jnp.mean(v, axis=-1, keepdims=True)
        var = jnp.mean((v - mu) ** 2, axis=-1, keepdims=True)
        return (v - mu) / jnp.sqrt(var + 1e-5) * g + beta

    h = x @ p["w0"] + p["b0"]
    h = jnp.maximum(ln(h, p["ln1_g"], p["ln1_b"]), 0.0)
    h = h @ p["w1"] + p["b1"]
    h = jnp.maximum(ln(h, p["ln2_g"], p["ln2_b"]), 0.0)
    h = jnp.maximum(h @ p["w2"] + p["b2"], 0.0)
    return h @ p["w3"] + p["b3"]


# ---------------------------------------------------------------------------
if __name__ == "__main__":
    BATCH, SEQ, INPUT_DIM, NUM_CLASSES = 8, 4, 1280, 2

    key = jax.random.PRNGKey(0)
    kx, kx3, kp = jax.random.split(key, 3)
    params = make_params(kp, INPUT_DIM, NUM_CLASSES)

    # 2-D input path
    x = jax.random.normal(kx, (BATCH, INPUT_DIM), jnp.float32)
    logits = balanced_mlp(x, params, NUM_CLASSES)
    jax.block_until_ready(logits)
    ref = reference_forward(x, params)
    assert logits.shape == (BATCH, NUM_CLASSES), "bad output shape"
    assert jnp.allclose(logits, ref, rtol=2e-2, atol=2e-2), "2-D logits mismatch"

    # 3-D input path (seq-mean fused inside the kernel)
    x3 = jax.random.normal(kx3, (BATCH, SEQ, INPUT_DIM), jnp.float32)
    logits3 = balanced_mlp(x3, params, NUM_CLASSES)
    jax.block_until_ready(logits3)
    ref3 = reference_forward(x3, params)
    assert logits3.shape == (BATCH, NUM_CLASSES), "bad 3-D output shape"
    assert jnp.allclose(logits3, ref3, rtol=2e-2, atol=2e-2), "3-D logits mismatch"

    print("KERNEL_OK")
</pallas_src>

<mosaic_0001>
module attributes {stable_mosaic.version = 11 : i64} {
  func.func @balanced_mlp_kernel(%arg0: i32, %arg1: memref<16x1280xf32, #tpu.memory_space<vmem>>, %arg2: memref<1280x256xbf16, #tpu.memory_space<vmem>>, %arg3: memref<256x256xbf16, #tpu.memory_space<vmem>>, %arg4: memref<256x128xbf16, #tpu.memory_space<vmem>>, %arg5: memref<128x128xbf16, #tpu.memory_space<vmem>>, %arg6: memref<8x256xf32, #tpu.memory_space<vmem>>, %arg7: memref<16x128xbf16, #tpu.memory_space<vmem>>) attributes {dimension_semantics = [#tpu.dimension_semantics<parallel>], iteration_bounds = array<i64: 1>, scalar_prefetch = 0 : i64, scratch_operands = 0 : i64, tpu.core_type = #tpu.core_type<tc>, window_params = [{transform_indices = @transform_0, window_bounds = array<i64: 16, 1280>}, {pipeline_mode = #tpu.pipeline_mode<synchronous>, transform_indices = @transform_1, window_bounds = array<i64: 1280, 256>}, {pipeline_mode = #tpu.pipeline_mode<synchronous>, transform_indices = @transform_2, window_bounds = array<i64: 256, 256>}, {pipeline_mode = #tpu.pipeline_mode<synchronous>, transform_indices = @transform_3, window_bounds = array<i64: 256, 128>}, {pipeline_mode = #tpu.pipeline_mode<synchronous>, transform_indices = @transform_4, window_bounds = array<i64: 128, 128>}, {pipeline_mode = #tpu.pipeline_mode<synchronous>, transform_indices = @transform_5, window_bounds = array<i64: 8, 256>}, {transform_indices = @transform_6, window_bounds = array<i64: 16, 128>}]} {
    %c0 = arith.constant 0 : index
    %c0_0 = arith.constant 0 : index
    %0 = vector.load %arg6[%c0, %c0_0] : memref<8x256xf32, #tpu.memory_space<vmem>>, vector<8x256xf32>
    %1 = vector.extract_strided_slice %0 {offsets = [0, 0], sizes = [1, 256], strides = [1, 1]} : vector<8x256xf32> to vector<1x256xf32>
    %2 = vector.extract_strided_slice %0 {offsets = [1, 0], sizes = [1, 256], strides = [1, 1]} : vector<8x256xf32> to vector<1x256xf32>
    %3 = vector.extract_strided_slice %0 {offsets = [2, 0], sizes = [1, 256], strides = [1, 1]} : vector<8x256xf32> to vector<1x256xf32>
    %4 = vector.extract_strided_slice %0 {offsets = [3, 0], sizes = [1, 256], strides = [1, 1]} : vector<8x256xf32> to vector<1x256xf32>
    %5 = vector.extract_strided_slice %0 {offsets = [4, 0], sizes = [1, 256], strides = [1, 1]} : vector<8x256xf32> to vector<1x256xf32>
    %6 = vector.extract_strided_slice %0 {offsets = [5, 0], sizes = [1, 256], strides = [1, 1]} : vector<8x256xf32> to vector<1x256xf32>
    %7 = vector.extract_strided_slice %0 {offsets = [6, 0], sizes = [1, 128], strides = [1, 1]} : vector<8x256xf32> to vector<1x128xf32>
    %8 = vector.extract_strided_slice %0 {offsets = [7, 0], sizes = [1, 128], strides = [1, 1]} : vector<8x256xf32> to vector<1x128xf32>
    %c0_1 = arith.constant 0 : index
    %c0_2 = arith.constant 0 : index
    %9 = vector.load %arg1[%c0_1, %c0_2] : memref<16x1280xf32, #tpu.memory_space<vmem>>, vector<16x1280xf32>
    %10 = arith.truncf %9 : vector<16x1280xf32> to vector<16x1280xbf16>
    %c0_3 = arith.constant 0 : index
    %c0_4 = arith.constant 0 : index
    %11 = vector.load %arg2[%c0_3, %c0_4] : memref<1280x256xbf16, #tpu.memory_space<vmem>>, vector<1280x256xbf16>
    %cst = arith.constant dense<0.000000e+00> : vector<16x256xf32>
    %12 = tpu.matmul %10, %11, %cst {dimension_numbers = #tpu.dot_dimension_numbers<[1], [0], [0], [1], [0, 0, 1, 1], [], []>} : vector<16x1280xbf16>, vector<1280x256xbf16>, vector<16x256xf32> -> vector<16x256xf32>
    %13 = vector.broadcast %1 : vector<1x256xf32> to vector<16x256xf32>
    %14 = arith.addf %12, %13 : vector<16x256xf32>
    %cst_5 = arith.constant dense<0.000000e+00> : vector<16xf32>
    %15 = vector.multi_reduction <add>, %14, %cst_5 [1] : vector<16x256xf32> to vector<16xf32>
    %16 = vector.shape_cast %15 : vector<16xf32> to vector<16x1xf32>
    %17 = arith.mulf %14, %14 : vector<16x256xf32>
    %cst_6 = arith.constant dense<0.000000e+00> : vector<16xf32>
    %18 = vector.multi_reduction <add>, %17, %cst_6 [1] : vector<16x256xf32> to vector<16xf32>
    %19 = vector.shape_cast %18 : vector<16xf32> to vector<16x1xf32>
    %cst_7 = arith.constant 3.906250e-03 : f32
    %20 = vector.broadcast %cst_7 : f32 to vector<16x1xf32>
    %21 = arith.mulf %16, %20 : vector<16x1xf32>
    %cst_8 = arith.constant 3.906250e-03 : f32
    %22 = vector.broadcast %cst_8 : f32 to vector<16x1xf32>
    %23 = arith.mulf %19, %22 : vector<16x1xf32>
    %24 = arith.mulf %21, %21 : vector<16x1xf32>
    %25 = arith.subf %23, %24 : vector<16x1xf32>
    %26 = vector.broadcast %21 : vector<16x1xf32> to vector<16x256xf32>
    %27 = arith.subf %14, %26 : vector<16x256xf32>
    %cst_9 = arith.constant 9.99999974E-6 : f32
    %28 = vector.broadcast %cst_9 : f32 to vector<16x1xf32>
    %29 = arith.addf %25, %28 : vector<16x1xf32>
    %30 = math.rsqrt %29 : vector<16x1xf32>
    %31 = vector.broadcast %30 : vector<16x1xf32> to vector<16x256xf32>
    %32 = arith.mulf %27, %31 : vector<16x256xf32>
    %33 = vector.broadcast %2 : vector<1x256xf32> to vector<16x256xf32>
    %34 = arith.mulf %32, %33 : vector<16x256xf32>
    %35 = vector.broadcast %3 : vector<1x256xf32> to vector<16x256xf32>
    %36 = arith.addf %34, %35 : vector<16x256xf32>
    %cst_10 = arith.constant 0.000000e+00 : f32
    %37 = vector.broadcast %cst_10 : f32 to vector<16x256xf32>
    %38 = arith.maximumf %36, %37 : vector<16x256xf32>
    %39 = arith.truncf %38 : vector<16x256xf32> to vector<16x256xbf16>
    %c0_11 = arith.constant 0 : index
    %c0_12 = arith.constant 0 : index
    %40 = vector.load %arg3[%c0_11, %c0_12] : memref<256x256xbf16, #tpu.memory_space<vmem>>, vector<256x256xbf16>
    %cst_13 = arith.constant dense<0.000000e+00> : vector<16x256xf32>
    %41 = tpu.matmul %39, %40, %cst_13 {dimension_numbers = #tpu.dot_dimension_numbers<[1], [0], [0], [1], [0, 0, 1, 1], [], []>} : vector<16x256xbf16>, vector<256x256xbf16>, vector<16x256xf32> -> vector<16x256xf32>
    %42 = vector.broadcast %4 : vector<1x256xf32> to vector<16x256xf32>
    %43 = arith.addf %41, %42 : vector<16x256xf32>
    %cst_14 = arith.constant dense<0.000000e+00> : vector<16xf32>
    %44 = vector.multi_reduction <add>, %43, %cst_14 [1] : vector<16x256xf32> to vector<16xf32>
    %45 = vector.shape_cast %44 : vector<16xf32> to vector<16x1xf32>
    %46 = arith.mulf %43, %43 : vector<16x256xf32>
    %cst_15 = arith.constant dense<0.000000e+00> : vector<16xf32>
    %47 = vector.multi_reduction <add>, %46, %cst_15 [1] : vector<16x256xf32> to vector<16xf32>
    %48 = vector.shape_cast %47 : vector<16xf32> to vector<16x1xf32>
    %cst_16 = arith.constant 0.00520833349 : f32
    %49 = vector.broadcast %cst_16 : f32 to vector<16x1xf32>
    %50 = arith.mulf %45, %49 : vector<16x1xf32>
    %cst_17 = arith.constant 0.00520833349 : f32
    %51 = vector.broadcast %cst_17 : f32 to vector<16x1xf32>
    %52 = arith.mulf %48, %51 : vector<16x1xf32>
    %53 = arith.mulf %50, %50 : vector<16x1xf32>
    %54 = arith.subf %52, %53 : vector<16x1xf32>
    %55 = vector.broadcast %50 : vector<16x1xf32> to vector<16x256xf32>
    %56 = arith.subf %43, %55 : vector<16x256xf32>
    %cst_18 = arith.constant 9.99999974E-6 : f32
    %57 = vector.broadcast %cst_18 : f32 to vector<16x1xf32>
    %58 = arith.addf %54, %57 : vector<16x1xf32>
    %59 = math.rsqrt %58 : vector<16x1xf32>
    %60 = vector.broadcast %59 : vector<16x1xf32> to vector<16x256xf32>
    %61 = arith.mulf %56, %60 : vector<16x256xf32>
    %62 = vector.broadcast %5 : vector<1x256xf32> to vector<16x256xf32>
    %63 = arith.mulf %61, %62 : vector<16x256xf32>
    %64 = vector.broadcast %6 : vector<1x256xf32> to vector<16x256xf32>
    %65 = arith.addf %63, %64 : vector<16x256xf32>
    %cst_19 = arith.constant 0.000000e+00 : f32
    %66 = vector.broadcast %cst_19 : f32 to vector<16x256xf32>
    %67 = arith.maximumf %65, %66 : vector<16x256xf32>
    %68 = arith.truncf %67 : vector<16x256xf32> to vector<16x256xbf16>
    %c0_20 = arith.constant 0 : index
    %c0_21 = arith.constant 0 : index
    %69 = vector.load %arg4[%c0_20, %c0_21] : memref<256x128xbf16, #tpu.memory_space<vmem>>, vector<256x128xbf16>
    %cst_22 = arith.constant dense<0.000000e+00> : vector<16x128xf32>
    %70 = tpu.matmul %68, %69, %cst_22 {dimension_numbers = #tpu.dot_dimension_numbers<[1], [0], [0], [1], [0, 0, 1, 1], [], []>} : vector<16x256xbf16>, vector<256x128xbf16>, vector<16x128xf32> -> vector<16x128xf32>
    %71 = vector.broadcast %7 : vector<1x128xf32> to vector<16x128xf32>
    %72 = arith.addf %70, %71 : vector<16x128xf32>
    %cst_23 = arith.constant 0.000000e+00 : f32
    %73 = vector.broadcast %cst_23 : f32 to vector<16x128xf32>
    %74 = arith.maximumf %72, %73 : vector<16x128xf32>
    %75 = arith.truncf %74 : vector<16x128xf32> to vector<16x128xbf16>
    %c0_24 = arith.constant 0 : index
    %c0_25 = arith.constant 0 : index
    %76 = vector.load %arg5[%c0_24, %c0_25] : memref<128x128xbf16, #tpu.memory_space<vmem>>, vector<128x128xbf16>
    %cst_26 = arith.constant dense<0.000000e+00> : vector<16x128xf32>
    %77 = tpu.matmul %75, %76, %cst_26 {dimension_numbers = #tpu.dot_dimension_numbers<[1], [0], [0], [1], [0, 0, 1, 1], [], []>} : vector<16x128xbf16>, vector<128x128xbf16>, vector<16x128xf32> -> vector<16x128xf32>
    %78 = vector.broadcast %8 : vector<1x128xf32> to vector<16x128xf32>
    %79 = arith.addf %77, %78 : vector<16x128xf32>
    %80 = arith.truncf %79 : vector<16x128xf32> to vector<16x128xbf16>
    %c0_27 = arith.constant 0 : index
    %c0_28 = arith.constant 0 : index
    %81 = vector.load %arg7[%c0_27, %c0_28] : memref<16x128xbf16, #tpu.memory_space<vmem>>, vector<16x128xbf16>
    tpu.vector_store %arg7[%c0_27, %c0_28], %80 {strides = array<i32>} : memref<16x128xbf16, #tpu.memory_space<vmem>>, vector<16x128xbf16>,
    return
  }
  func.func @transform_0(%arg0: i32) -> (i32, i32) {
    %c0_i32 = arith.constant 0 : i32
    %c0_i32_0 = arith.constant 0 : i32
    return %arg0, %c0_i32 : i32, i32
  }
  func.func @transform_1(%arg0: i32) -> (i32, i32) {
    %c0_i32 = arith.constant 0 : i32
    %c0_i32_0 = arith.constant 0 : i32
    %c0_i32_1 = arith.constant 0 : i32
    return %c0_i32, %c0_i32_0 : i32, i32
  }
  func.func @transform_2(%arg0: i32) -> (i32, i32) {
    %c0_i32 = arith.constant 0 : i32
    %c0_i32_0 = arith.constant 0 : i32
    %c0_i32_1 = arith.constant 0 : i32
    return %c0_i32, %c0_i32_0 : i32, i32
  }
  func.func @transform_3(%arg0: i32) -> (i32, i32) {
    %c0_i32 = arith.constant 0 : i32
    %c0_i32_0 = arith.constant 0 : i32
    %c0_i32_1 = arith.constant 0 : i32
    return %c0_i32, %c0_i32_0 : i32, i32
  }
  func.func @transform_4(%arg0: i32) -> (i32, i32) {
    %c0_i32 = arith.constant 0 : i32
    %c0_i32_0 = arith.constant 0 : i32
    %c0_i32_1 = arith.constant 0 : i32
    return %c0_i32, %c0_i32_0 : i32, i32
  }
  func.func @transform_5(%arg0: i32) -> (i32, i32) {
    %c0_i32 = arith.constant 0 : i32
    %c0_i32_0 = arith.constant 0 : i32
    %c0_i32_1 = arith.constant 0 : i32
    return %c0_i32, %c0_i32_0 : i32, i32
  }
  func.func @transform_6(%arg0: i32) -> (i32, i32) {
    %c0_i32 = arith.constant 0 : i32
    %c0_i32_0 = arith.constant 0 : i32
    return %arg0, %c0_i32 : i32, i32
  }
}

</mosaic_0001>

<bundles_post_ra>
// kernel: tpu_custom_call.1
= control target key start
LH: loop header
LB: loop body
LE: loop exit
PB: predicated region body
PF: predicated region fallthrough
CT: control target
= control target key end

     0   :  { %11 = vsyncpa [#allocation3], 0  ;;  %s2942_s0 = inlined_call_operand.hbm [shape: f32[16,1280], index: 0, kind: input, shape index: {}]   ;;  %s2943_s1 = inlined_call_operand.hbm [shape: bf16[1280,256], index: 1, kind: input, shape index: {}]   ;;  %s2944_s2 = inlined_call_operand.hbm [shape: bf16[256,256], index: 2, kind: input, shape index: {}]   ;;  %s2945_s3 = inlined_call_operand.hbm [shape: bf16[256,128], index: 3, kind: input, shape index: {}]   ;;  %s2946_s4 = inlined_call_operand.hbm [shape: bf16[128,128], index: 4, kind: input, shape index: {}]   ;;  %s2947_s5 = inlined_call_operand.hbm [shape: f32[8,256], index: 5, kind: input, shape index: {}]   ;;  %s2948_s6 = inlined_call_operand.hbm [shape: bf16[16,128], index: 6, kind: output, shape index: {}]  }
   0x1   :  { %12 = vsyncpa [#allocation6], 0 }
   0x2   :  { %13 = vsyncpa [#allocation9], 0 }
   0x3   :  { %14 = vsyncpa [#allocation12], 0 }
   0x4   :  { %15 = vsyncpa [#allocation4], 0  ;;  %s2771_s21 = smov [#allocation5]  }
   0x5   :  { %s33_s22 = sshll.u32 %s2771_s21, 4  ;;  %s34_s22 = int_to_ptr.vmem [resolvable:$true] %s33_s22 }
   0x6   :  { %s2629_s23 = scalar_lea.vmem %s34_s22, 20480  ;;  %p2634_p1 = scmp.lt.s32.totalorder %s34_s22, %s34_s22 }
   0x7   :  { %p2630_p0 = scmp.ne.s32.totalorder %s34_s22, %s2629_s23  ;;  %p2635_p2 = scmp.lt.s32.totalorder %s2629_s23, %s2629_s23 }
   0x9   :  { %p2636_p3 = por %p2635_p2, %p2634_p1 }
   0xb   :  { %p2637_p4 = pnand %p2636_p3, %p2630_p0 }
   0xd   :  { %2640 = shalt.err (!%p2637_p4)
}
   0xe   :  { %s2772_s24 = smov 128   ;;  %s2773_s25 = smov 8  }
   0xf   :  { %39 = dma.hbm_to_vmem [thread:$0]  %s2943_s1, 20480, %s34_s22, [#allocation6], %s2772_s24, %s2772_s24, %s2773_s25  }
  0x10   :  { %s2774_s28 = smov [#allocation8]  }
  0x11   :  { %s57_s29 = sshll.u32 %s2774_s28, 4  ;;  %s58_s29 = int_to_ptr.vmem [resolvable:$true] %s57_s29 }
  0x12   :  { %s2649_s30 = scalar_lea.vmem %s58_s29, 2048  ;;  %p2654_p6 = scmp.lt.s32.totalorder %s58_s29, %s58_s29 }
  0x13   :  { %p2650_p5 = scmp.ne.s32.totalorder %s58_s29, %s2649_s30  ;;  %p2655_p7 = scmp.lt.s32.totalorder %s2649_s30, %s2649_s30 }
  0x15   :  { %p2656_p8 = por %p2655_p7, %p2654_p6 }
  0x17   :  { %p2657_p9 = pnand %p2656_p8, %p2650_p5 }
  0x19   :  { %2660 = shalt.err (!%p2657_p9)
}
  0x1a   :  { %s2775_s7 = smov 64   ;;  %s2776_s8 = smov 4  }
  0x1b   :  { %63 = dma.hbm_to_vmem [thread:$0]  %s2945_s3, 2048, %s58_s29, [#allocation9], %s2775_s7, %s2775_s7, %s2776_s8  }
  0x1c   :  { %s2777_s1 = smov [#allocation2]  }
  0x1d   :  { %s21_s11 = sshll.u32 %s2777_s1, 4  ;;  %s22_s11 = int_to_ptr.vmem [resolvable:$true] %s21_s11 }
  0x1e   :  { %s2669_s12 = scalar_lea.vmem %s22_s11, 2560  ;;  %p2674_p11 = scmp.lt.s32.totalorder %s22_s11, %s22_s11 }
  0x1f   :  { %p2670_p10 = scmp.ne.s32.totalorder %s22_s11, %s2669_s12  ;;  %p2675_p12 = scmp.lt.s32.totalorder %s2669_s12, %s2669_s12 }
  0x21   :  { %p2676_p13 = por %p2675_p12, %p2674_p11 }
  0x23   :  { %p2677_p0 = pnand %p2676_p13, %p2670_p10 }
  0x25   :  { %2680 = shalt.err (!%p2677_p0)
}
  0x26   :  { %s2778_s13 = smov 1280   ;;  %s2779_s14 = smov 80  }
  0x27   :  { %27 = dma.hbm_to_vmem [thread:$0]  %s2942_s0, 2560, %s22_s11, [#allocation3], %s2778_s13, %s2778_s13, %s2779_s14  }
  0x28   :  { %s2780_s17 = smov [#allocation7]   ;;  %s2781_s3 = smov [#allocation10]  }
  0x29   :  { %s45_s18 = sshll.u32 %s2780_s17, 4  ;;  %s69_s19 = sshll.u32 %s2781_s3, 4  ;;  %s46_s18 = int_to_ptr.vmem [resolvable:$true] %s45_s18  ;;  %s70_s19 = int_to_ptr.vmem [resolvable:$true] %s69_s19 }
  0x2a   :  { %s2689_s20 = scalar_lea.vmem %s46_s18, 4096  ;;  %p2694_p2 = scmp.lt.s32.totalorder %s46_s18, %s46_s18 }
  0x2b   :  { %p2690_p1 = scmp.ne.s32.totalorder %s46_s18, %s2689_s20  ;;  %p2695_p3 = scmp.lt.s32.totalorder %s2689_s20, %s2689_s20 }
  0x2d   :  { %p2696_p4 = por %p2695_p3, %p2694_p2 }
  0x2f   :  { %p2697_p5 = pnand %p2696_p4, %p2690_p1 }
  0x31   :  { %2700 = shalt.err (!%p2697_p5)
}
  0x32   :  { %51 = dma.hbm_to_vmem [thread:$0]  %s2944_s2, 4096, %s46_s18, [#allocation6], %s2772_s24, %s2772_s24, %s2773_s25  }
  0x33   :  { %s2709_s0 = scalar_lea.vmem %s70_s19, 1024  ;;  %p2714_p7 = scmp.lt.s32.totalorder %s70_s19, %s70_s19 }
  0x34   :  { %p2710_p6 = scmp.ne.s32.totalorder %s70_s19, %s2709_s0  ;;  %p2715_p8 = scmp.lt.s32.totalorder %s2709_s0, %s2709_s0 }
  0x36   :  { %p2716_p9 = por %p2715_p8, %p2714_p7 }
  0x38   :  { %p2717_p10 = pnand %p2716_p9, %p2710_p6 }
  0x3a   :  { %2720 = shalt.err (!%p2717_p10)
}
  0x3b   :  { %75 = dma.hbm_to_vmem [thread:$0]  %s2946_s4, 1024, %s70_s19, [#allocation9], %s2775_s7, %s2775_s7, %s2776_s8  }
  0x3c   :  { %s2782_s27 = smov [#allocation11]  }
  0x3d   :  { %s82_s28 = sshll.u32 %s2782_s27, 4  ;;  %s83_s28 = int_to_ptr.vmem [resolvable:$true] %s82_s28 }
  0x3e   :  { %s2729_s29 = scalar_lea.vmem %s83_s28, 256  ;;  %p2734_p12 = scmp.lt.s32.totalorder %s83_s28, %s83_s28 }
  0x3f   :  { %p2730_p11 = scmp.ne.s32.totalorder %s83_s28, %s2729_s29  ;;  %p2735_p13 = scmp.lt.s32.totalorder %s2729_s29, %s2729_s29 }
  0x41   :  { %p2736_p0 = por %p2735_p13, %p2734_p12 }
  0x43   :  { %p2737_p1 = pnand %p2736_p0, %p2730_p11 }
  0x45   :  { %2740 = shalt.err (!%p2737_p1)
}
  0x46   :  { %85 = dma.hbm_to_vmem [thread:$0]  %s2947_s5, 256, %s83_s28, [#allocation12]  }
  0x47   :  { %2761 = dma.done.wait [#allocation3], 2560  }
  0x48   :  { %2762 = vsyncadd [#allocation3], 4294964736 }
  0x49   :  { %2763 = dma.done.wait [#allocation6], 24576  }
  0x4a   :  { %2764 = vsyncadd [#allocation6], 4294942720 }
  0x4b   :  { %2765 = dma.done.wait [#allocation9], 3072  }
  0x4c   :  { %2766 = vsyncadd [#allocation9], 4294964224 }
  0x4d   :  { %2767 = dma.done.wait [#allocation12], 256  }
  0x4e   :  { %2768 = vsyncadd [#allocation12], 4294967040  ;;  %v2301_v0 = vld [vmem:[#allocation5 + $0x74] ss:$8 sps:$4 sm:$0xff]   ;;  %v2303_v1 = vld [vmem:[#allocation5 + $0x70] ss:$8 sps:$4 sm:$0xff]  }
  0x4f   :  { %1105 = vmatprep.subr.bf16.mxu0 %v2301_v0  ;;  %v2304_v2 = vld [vmem:[#allocation5 + $0x174] ss:$8 sps:$4 sm:$0xff]   ;;  %v2306_v3 = vld [vmem:[#allocation5 + $0x170] ss:$8 sps:$4 sm:$0xff]   ;;  %v2307_v4 = vld [vmem:[#allocation5 + $0x64] ss:$8 sps:$4 sm:$0xff]  }
  0x50   :  { %1106 = vmatpush1.bf16.msra.mxu0 %v2303_v1  ;;  %v2309_v5 = vld [vmem:[#allocation5 + $0x60] ss:$8 sps:$4 sm:$0xff]   ;;  %1148 = vmatprep.subr.bf16.mxu1 %v2304_v2  ;;  %v2310_v6 = vld [vmem:[#allocation5 + $0x164] ss:$8 sps:$4 sm:$0xff]   ;;  %v2313_v8 = vld [vmem:[#allocation5 + $0x54] ss:$8 sps:$4 sm:$0xff]  }
  0x51   :  { %1149 = vmatpush1.bf16.msra.mxu1 %v2306_v3  ;;  %1107 = vmatprep.subr.bf16.mxu0 %v2307_v4  ;;  %v2312_v7 = vld [vmem:[#allocation5 + $0x160] ss:$8 sps:$4 sm:$0xff]   ;;  %v2315_v9 = vld [vmem:[#allocation5 + $0x50] ss:$8 sps:$4 sm:$0xff]   ;;  %v2316_v10 = vld [vmem:[#allocation5 + $0x154] ss:$8 sps:$4 sm:$0xff]  }
  0x52   :  { %1150 = vmatprep.subr.bf16.mxu1 %v2310_v6  ;;  %v2319_v11 = vld [vmem:[#allocation5 + $0x44] ss:$8 sps:$4 sm:$0xff]   ;;  %v2318_v12 = vld [vmem:[#allocation5 + $0x150] ss:$8 sps:$4 sm:$0xff]   ;;  %v2321_v14 = vld [vmem:[#allocation5 + $0x40] ss:$8 sps:$4 sm:$0xff]  }
  0x53   :  { %v2322_v13 = vld [vmem:[#allocation5 + $0x144] ss:$8 sps:$4 sm:$0xff]   ;;  %v2325_v15 = vld [vmem:[#allocation5 + $0x34] ss:$8 sps:$4 sm:$0xff]   ;;  %v2324_v16 = vld [vmem:[#allocation5 + $0x140] ss:$8 sps:$4 sm:$0xff]  }
  0x54   :  { %1108 = vmatpush1.bf16.msra.mxu0 %v2309_v5  ;;  %v2328_v17 = vld [vmem:[#allocation5 + $0x134] ss:$8 sps:$4 sm:$0xff]   ;;  %v2327_v18 = vld [vmem:[#allocation5 + $0x30] ss:$8 sps:$4 sm:$0xff]   ;;  %v2331_v19 = vld [vmem:[#allocation5 + $0x24] ss:$8 sps:$4 sm:$0xff]  }
  0x55   :  { %1109 = vmatprep.subr.bf16.mxu0 %v2313_v8  ;;  %1151 = vmatpush1.bf16.msra.mxu1 %v2312_v7  ;;  %v2330_v20 = vld [vmem:[#allocation5 + $0x130] ss:$8 sps:$4 sm:$0xff]   ;;  %v2334_v21 = vld [vmem:[#allocation5 + $0x124] ss:$8 sps:$4 sm:$0xff]   ;;  %v2333_v22 = vld [vmem:[#allocation5 + $0x20] ss:$8 sps:$4 sm:$0xff]  }
  0x56   :  { %1152 = vmatprep.subr.bf16.mxu1 %v2316_v10  ;;  %v2337_v23 = vld [vmem:[#allocation5 + $0x14] ss:$8 sps:$4 sm:$0xff]   ;;  %v2336_v24 = vld [vmem:[#allocation5 + $0x120] ss:$8 sps:$4 sm:$0xff]   ;;  %v2339_v26 = vld [vmem:[#allocation5 + $0x10] ss:$8 sps:$4 sm:$0xff]  }
  0x57   :  { %v2340_v25 = vld [vmem:[#allocation5 + $0x114] ss:$8 sps:$4 sm:$0xff]   ;;  %v2343_v27 = vld [vmem:[#allocation5 + $0x4] ss:$8 sps:$4 sm:$0xff]   ;;  %v2342_v28 = vld [vmem:[#allocation5 + $0x110] ss:$8 sps:$4 sm:$0xff]  }
  0x58   :  { %1110 = vmatpush1.bf16.msra.mxu0 %v2315_v9  ;;  %v2346_v29 = vld [vmem:[#allocation5 + $0x104] ss:$8 sps:$4 sm:$0xff]   ;;  %v2345_v30 = vld [vmem:[#allocation5] ss:$8 sps:$4 sm:$0xff]   ;;  %v2349_v31 = vld [vmem:[#allocation5 + $0xf4] ss:$8 sps:$4 sm:$0xff]  }
  0x59   :  { %1111 = vmatprep.subr.bf16.mxu0 %v2319_v11  ;;  %1153 = vmatpush1.bf16.msra.mxu1 %v2318_v12  ;;  %v2348_v32 = vld [vmem:[#allocation5 + $0x100] ss:$8 sps:$4 sm:$0xff]   ;;  %v2352_v33 = vld [vmem:[#allocation5 + $0x1f4] ss:$8 sps:$4 sm:$0xff]   ;;  %v2351_v34 = vld [vmem:[#allocation5 + $0xf0] ss:$8 sps:$4 sm:$0xff]  }
  0x5a   :  { %1154 = vmatprep.subr.bf16.mxu1 %v2322_v13  ;;  %v2355_v35 = vld [vmem:[#allocation5 + $0xe4] ss:$8 sps:$4 sm:$0xff]   ;;  %v2354_v36 = vld [vmem:[#allocation5 + $0x1f0] ss:$8 sps:$4 sm:$0xff]   ;;  %v2357_v38 = vld [vmem:[#allocation5 + $0xe0] ss:$8 sps:$4 sm:$0xff]  }
  0x5b   :  { %v2358_v37 = vld [vmem:[#allocation5 + $0x1e4] ss:$8 sps:$4 sm:$0xff]   ;;  %v2361_v39 = vld [vmem:[#allocation5 + $0xd4] ss:$8 sps:$4 sm:$0xff]   ;;  %v2360_v40 = vld [vmem:[#allocation5 + $0x1e0] ss:$8 sps:$4 sm:$0xff]  }
  0x5c   :  { %1112 = vmatpush1.bf16.msra.mxu0 %v2321_v14  ;;  %v2364_v41 = vld [vmem:[#allocation5 + $0x1d4] ss:$8 sps:$4 sm:$0xff]   ;;  %v2363_v42 = vld [vmem:[#allocation5 + $0xd0] ss:$8 sps:$4 sm:$0xff]   ;;  %v2367_v43 = vld [vmem:[#allocation5 + $0xc4] ss:$8 sps:$4 sm:$0xff]  }
  0x5d   :  { %1113 = vmatprep.subr.bf16.mxu0 %v2325_v15  ;;  %1155 = vmatpush1.bf16.msra.mxu1 %v2324_v16  ;;  %v2366_v44 = vld [vmem:[#allocation5 + $0x1d0] ss:$8 sps:$4 sm:$0xff]   ;;  %v2370_v45 = vld [vmem:[#allocation5 + $0x1c4] ss:$8 sps:$4 sm:$0xff]   ;;  %v2369_v48 = vld [vmem:[#allocation5 + $0xc0] ss:$8 sps:$4 sm:$0xff]  }
  0x5e   :  { %1156 = vmatprep.subr.bf16.mxu1 %v2328_v17  ;;  %v108_v46 = vld [vmem:[#allocation2 + $0x8] sm:$0xff]  ;;  %v118_v47 = vld [vmem:[#allocation2 + $0x58] sm:$0xff]  ;;  %v107_v5 = vld [vmem:[#allocation2] sm:$0xff]  ;;  %vm2784_vm0 = vmmov 0   ;;  %s2785_s4 = smov [#allocation13]  }
  0x5f   :  { %v128_v49 = vpack.c.bf16 %v118_v47, %v108_v46  ;;  %v2373_v50 = vld [vmem:[#allocation5 + $0xb4] ss:$8 sps:$4 sm:$0xff]   ;;  %v2372_v51 = vld [vmem:[#allocation5 + $0x1c0] ss:$8 sps:$4 sm:$0xff]   ;;  %v2375_v56 = vld [vmem:[#allocation5 + $0xb0] ss:$8 sps:$4 sm:$0xff]  }
  0x60   :  { %1114 = vmatpush1.bf16.msra.mxu0 %v2327_v18  ;;  %v110_v52 = vld [vmem:[#allocation2 + $0x18] sm:$0xff]  ;;  %v120_v53 = vld [vmem:[#allocation2 + $0x68] sm:$0xff]  ;;  %v117_v7 = vld [vmem:[#allocation2 + $0x50] sm:$0xff]  ;;  %s1995_s5 = sshll.u32 %s2785_s4, 4  ;;  %s1996_s5 = int_to_ptr.vmem [resolvable:$true] %s1995_s5 }
  0x61   :  { %1115 = vmatprep.subr.bf16.mxu0 %v2331_v19  ;;  %1157 = vmatpush1.bf16.msra.mxu1 %v2330_v20  ;;  %v2376_v54 = vld [vmem:[#allocation5 + $0x1b4] ss:$8 sps:$4 sm:$0xff]   ;;  %v130_v55 = vpack.c.bf16 %v120_v53, %v110_v52  ;;  %v2379_v57 = vld [vmem:[#allocation5 + $0xa4] ss:$8 sps:$4 sm:$0xff]   ;;  %v2378_v58 = vld [vmem:[#allocation5 + $0x1b0] ss:$8 sps:$4 sm:$0xff]   ;;  %v127_v11 = vpack.c.bf16 %v117_v7, %v107_v5  ;;  %p2746_p3 = scmp.lt.s32.totalorder %s1996_s5, %s1996_s5 }
  0x62   :  { %1158 = vmatprep.subr.bf16.mxu1 %v2334_v21  ;;  %1137 = vmatprep.mubr.bf16.mxu0 %v128_v49  ;;  %v2382_v59 = vld [vmem:[#allocation5 + $0x1a4] ss:$8 sps:$4 sm:$0xff]   ;;  %v2381_v60 = vld [vmem:[#allocation5 + $0xa0] ss:$8 sps:$4 sm:$0xff]   ;;  %v2385_v61 = vld [vmem:[#allocation5 + $0x94] ss:$8 sps:$4 sm:$0xff]  }
  0x63   :  { %1180 = vmatprep.mubr.bf16.mxu1 %v130_v55  ;;  %v2384_v62 = vld [vmem:[#allocation5 + $0x1a0] ss:$8 sps:$4 sm:$0xff]   ;;  %v2388_v63 = vld [vmem:[#allocation5 + $0x194] ss:$8 sps:$4 sm:$0xff]   ;;  %v2387_v0 = vld [vmem:[#allocation5 + $0x90] ss:$8 sps:$4 sm:$0xff]  }
  0x64   :  { %1116 = vmatpush1.bf16.msra.mxu0 %v2333_v22  ;;  %v2390_v1 = vld [vmem:[#allocation5 + $0x190] ss:$8 sps:$4 sm:$0xff]   ;;  %v2391_v2 = vld [vmem:[#allocation5 + $0x84] ss:$8 sps:$4 sm:$0xff]   ;;  %v2393_v3 = vld [vmem:[#allocation5 + $0x80] ss:$8 sps:$4 sm:$0xff]  }
  0x65   :  { %1117 = vmatprep.subr.bf16.mxu0 %v2337_v23  ;;  %1159 = vmatpush1.bf16.msra.mxu1 %v2336_v24  ;;  %v2394_v4 = vld [vmem:[#allocation5 + $0x184] ss:$8 sps:$4 sm:$0xff]   ;;  %v2396_v6 = vld [vmem:[#allocation5 + $0x180] ss:$8 sps:$4 sm:$0xff]   ;;  %v2399_v8 = vld [vmem:[#allocation5 + $0x274] ss:$8 sps:$4 sm:$0xff]  }
  0x66   :  { %1160 = vmatprep.subr.bf16.mxu1 %v2340_v25  ;;  %v109_v9 = vld [vmem:[#allocation2 + $0x10] sm:$0xff]  ;;  %v119_v10 = vld [vmem:[#allocation2 + $0x60] sm:$0xff]  ;;  %v124_v47 = vld [vmem:[#allocation2 + $0x88] sm:$0xff]  ;;  %s2741_s25 = scalar_lea.vmem %s1996_s5, 128 }
  0x67   :  { %v2402_v12 = vld [vmem:[#allocation5 + $0x374] ss:$8 sps:$4 sm:$0xff]   ;;  %v2397_v13 = vld [vmem:[#allocation5 + $0x270] ss:$8 sps:$4 sm:$0xff]   ;;  %v129_v14 = vpack.c.bf16 %v119_v10, %v109_v9  ;;  %v2405_v15 = vld [vmem:[#allocation5 + $0x264] ss:$8 sps:$4 sm:$0xff]   ;;  %p2742_p2 = scmp.ne.s32.totalorder %s1996_s5, %s2741_s25  ;;  %p2747_p4 = scmp.lt.s32.totalorder %s2741_s25, %s2741_s25 }
  0x68   :  { %1118 = vmatpush1.bf16.msra.mxu0 %v2339_v26  ;;  %v2400_v16 = vld [vmem:[#allocation5 + $0x370] ss:$8 sps:$4 sm:$0xff]   ;;  %v2408_v17 = vld [vmem:[#allocation5 + $0x364] ss:$8 sps:$4 sm:$0xff]   ;;  %v2403_v18 = vld [vmem:[#allocation5 + $0x260] ss:$8 sps:$4 sm:$0xff]  }
  0x69   :  { %1119 = vmatprep.subr.bf16.mxu0 %v2343_v27  ;;  %1161 = vmatpush1.bf16.msra.mxu1 %v2342_v28  ;;  %v2411_v19 = vld [vmem:[#allocation5 + $0x254] ss:$8 sps:$4 sm:$0xff]   ;;  %v2406_v20 = vld [vmem:[#allocation5 + $0x360] ss:$8 sps:$4 sm:$0xff]   ;;  %v2409_v22 = vld [vmem:[#allocation5 + $0x250] ss:$8 sps:$4 sm:$0xff]   ;;  %p2748_p5 = por %p2747_p4, %p2746_p3 }
  0x6a   :  { %1162 = vmatprep.subr.bf16.mxu1 %v2346_v29  ;;  %v2414_v21 = vld [vmem:[#allocation5 + $0x354] ss:$8 sps:$4 sm:$0xff]   ;;  %v2417_v23 = vld [vmem:[#allocation5 + $0x244] ss:$8 sps:$4 sm:$0xff]   ;;  %v2412_v24 = vld [vmem:[#allocation5 + $0x350] ss:$8 sps:$4 sm:$0xff]  }
  0x6b   :  { %v2420_v25 = vld [vmem:[#allocation5 + $0x344] ss:$8 sps:$4 sm:$0xff]   ;;  %v2415_v26 = vld [vmem:[#allocation5 + $0x240] ss:$8 sps:$4 sm:$0xff]   ;;  %v2423_v27 = vld [vmem:[#allocation5 + $0x234] ss:$8 sps:$4 sm:$0xff]   ;;  %p2749_p6 = pnand %p2748_p5, %p2742_p2 }
  0x6c   :  { %1120 = vmatpush1.bf16.msra.mxu0 %v2345_v30  ;;  %v2418_v28 = vld [vmem:[#allocation5 + $0x340] ss:$8 sps:$4 sm:$0xff]   ;;  %v2426_v29 = vld [vmem:[#allocation5 + $0x334] ss:$8 sps:$4 sm:$0xff]   ;;  %v2421_v30 = vld [vmem:[#allocation5 + $0x230] ss:$8 sps:$4 sm:$0xff]  }
  0x6d   :  { %1121 = vmatprep.subr.bf16.mxu0 %v2349_v31  ;;  %1163 = vmatpush1.bf16.msra.mxu1 %v2348_v32  ;;  %v2429_v31 = vld [vmem:[#allocation5 + $0x224] ss:$8 sps:$4 sm:$0xff]   ;;  %v2424_v32 = vld [vmem:[#allocation5 + $0x330] ss:$8 sps:$4 sm:$0xff]   ;;  %v2439_v46 = vld [vmem:[#allocation5 + $0x200] ss:$8 sps:$4 sm:$0xff]  }
  0x6e   :  { %1164 = vmatprep.subr.bf16.mxu1 %v2352_v33  ;;  %v2432_v33 = vld [vmem:[#allocation5 + $0x324] ss:$8 sps:$4 sm:$0xff]   ;;  %v2445_v52 = vld [vmem:[#allocation5 + $0x2f0] ss:$8 sps:$4 sm:$0xff]   ;;  %v2475_v7 = vld [vmem:[#allocation5 + $0x2a0] ss:$8 sps:$4 sm:$0xff]  }
  0x6f   :  { %v2453_v53 = vld [vmem:[#allocation5 + $0x2e4] ss:$8 sps:$4 sm:$0xff]   ;;  %v2472_v5 = vld [vmem:[#allocation5 + $0x3b0] ss:$8 sps:$4 sm:$0xff]   ;;  %v2483_v9 = vld [vmem:[#allocation5 + $0x294] ss:$8 sps:$4 sm:$0xff]  }
  0x70   :  { %1122 = vmatpush2.bf16.msra.mxu0 %v2351_v34  ;;  %v2427_v34 = vld [vmem:[#allocation5 + $0x220] ss:$8 sps:$4 sm:$0xff]   ;;  %v2456_v55 = vld [vmem:[#allocation5 + $0x3e4] ss:$8 sps:$4 sm:$0xff]  }
  0x71   :  { %1123 = vmatprep.subr.bf16.mxu0 %v2355_v35  ;;  %1165 = vmatpush2.bf16.msra.mxu1 %v2354_v36  ;;  %v2435_v35 = vld [vmem:[#allocation5 + $0x214] ss:$8 sps:$4 sm:$0xff]   ;;  %v2430_v36 = vld [vmem:[#allocation5 + $0x320] ss:$8 sps:$4 sm:$0xff]  }
  0x72   :  { %1166 = vmatprep.subr.bf16.mxu1 %v2358_v37  ;;  %v2438_v37 = vld [vmem:[#allocation5 + $0x314] ss:$8 sps:$4 sm:$0xff]   ;;  %v2478_v10 = vld [vmem:[#allocation5 + $0x3a0] ss:$8 sps:$4 sm:$0xff]  }
  0x74   :  { %1124 = vmatpush2.bf16.msra.mxu0 %v2357_v38  ;;  %v2433_v38 = vld [vmem:[#allocation5 + $0x210] ss:$8 sps:$4 sm:$0xff]  }
  0x75   :  { %1125 = vmatprep.subr.bf16.mxu0 %v2361_v39  ;;  %1167 = vmatpush2.bf16.msra.mxu1 %v2360_v40  ;;  %v2441_v39 = vld [vmem:[#allocation5 + $0x204] ss:$8 sps:$4 sm:$0xff]  }
  0x76   :  { %1168 = vmatprep.subr.bf16.mxu1 %v2364_v41  ;;  %v112_v40 = vld [vmem:[#allocation2 + $0x28] sm:$0xff]  ;;  %v122_v41 = vld [vmem:[#allocation2 + $0x78] sm:$0xff] }
  0x78   :  { %1126 = vmatpush2.bf16.msra.mxu0 %v2363_v42  ;;  %v2436_v42 = vld [vmem:[#allocation5 + $0x310] ss:$8 sps:$4 sm:$0xff]  }
  0x79   :  { %1127 = vmatprep.subr.bf16.mxu0 %v2367_v43  ;;  %1169 = vmatpush2.bf16.msra.mxu1 %v2366_v44  ;;  %v132_v43 = vpack.c.bf16 %v122_v41, %v112_v40  ;;  %v2444_v44 = vld [vmem:[#allocation5 + $0x304] ss:$8 sps:$4 sm:$0xff]   ;;  %v2511_v40 = vld [vmem:[#allocation5 + $0x410] ss:$8 sps:$4 sm:$0xff]  }
  0x7a   :  { %1170 = vmatprep.subr.bf16.mxu1 %v2370_v45  ;;  %v114_v45 = vld [vmem:[#allocation2 + $0x38] sm:$0xff]  ;;  %v2516_v41 = vld [vmem:[#allocation5 + $0x404] ss:$8 sps:$4 sm:$0xff]  }
  0x7b   :  { %v134_v49 = vpack.c.bf16 %v124_v47, %v114_v45  ;;  %v2522_v45 = vld [vmem:[#allocation5 + $0x4e4] ss:$8 sps:$4 sm:$0xff]   ;;  %v2525_v47 = vld [vmem:[#allocation5 + $0x4d4] ss:$8 sps:$4 sm:$0xff]  }
  0x7c   :  { %1128 = vmatpush2.bf16.msra.mxu0 %v2369_v48  ;;  %v2447_v48 = vld [vmem:[#allocation5 + $0x2f4] ss:$8 sps:$4 sm:$0xff]  }
  0x7d   :  { %1129 = vmatprep.subr.bf16.mxu0 %v2373_v50  ;;  %1171 = vmatpush2.bf16.msra.mxu1 %v2372_v51  ;;  %v2442_v50 = vld [vmem:[#allocation5 + $0x300] ss:$8 sps:$4 sm:$0xff]   ;;  %v2450_v51 = vld [vmem:[#allocation5 + $0x3f4] ss:$8 sps:$4 sm:$0xff]  }
  0x7e   :  { %1172 = vmatprep.subr.bf16.mxu1 %v2376_v54  ;;  %v2448_v54 = vld [vmem:[#allocation5 + $0x3f0] ss:$8 sps:$4 sm:$0xff]  }
  0x80   :  { %1130 = vmatpush2.bf16.msra.mxu0 %v2375_v56  ;;  %v2451_v56 = vld [vmem:[#allocation5 + $0x2e0] ss:$8 sps:$4 sm:$0xff]  }
  0x81   :  { %1131 = vmatprep.subr.bf16.mxu0 %v2379_v57  ;;  %1173 = vmatpush2.bf16.msra.mxu1 %v2378_v58  ;;  %v2459_v57 = vld [vmem:[#allocation5 + $0x2d4] ss:$8 sps:$4 sm:$0xff]   ;;  %v2454_v58 = vld [vmem:[#allocation5 + $0x3e0] ss:$8 sps:$4 sm:$0xff]  }
  0x82   :  { %1174 = vmatprep.subr.bf16.mxu1 %v2382_v59  ;;  %v2462_v59 = vld [vmem:[#allocation5 + $0x3d4] ss:$8 sps:$4 sm:$0xff]  }
  0x84   :  { %1132 = vmatpush2.bf16.msra.mxu0 %v2381_v60  ;;  %v2457_v60 = vld [vmem:[#allocation5 + $0x2d0] ss:$8 sps:$4 sm:$0xff]  }
  0x85   :  { %1133 = vmatprep.subr.bf16.mxu0 %v2385_v61  ;;  %1175 = vmatpush2.bf16.msra.mxu1 %v2384_v62  ;;  %v2465_v61 = vld [vmem:[#allocation5 + $0x2c4] ss:$8 sps:$4 sm:$0xff]   ;;  %v2460_v62 = vld [vmem:[#allocation5 + $0x3d0] ss:$8 sps:$4 sm:$0xff]  }
  0x86   :  { %1176 = vmatprep.subr.bf16.mxu1 %v2388_v63  ;;  %v2468_v63 = vld [vmem:[#allocation5 + $0x3c4] ss:$8 sps:$4 sm:$0xff]  }
  0x88   :  { %1134 = vmatpush2.bf16.msra.mxu0 %v2387_v0  ;;  %v2463_v0 = vld [vmem:[#allocation5 + $0x2c0] ss:$8 sps:$4 sm:$0xff]  }
  0x89   :  { %1135 = vmatprep.subr.bf16.mxu0 %v2391_v2  ;;  %1177 = vmatpush2.bf16.msra.mxu1 %v2390_v1  ;;  %v2471_v1 = vld [vmem:[#allocation5 + $0x2b4] ss:$8 sps:$4 sm:$0xff]   ;;  %v2466_v2 = vld [vmem:[#allocation5 + $0x3c0] ss:$8 sps:$4 sm:$0xff]  }
  0x8a   :  { %1178 = vmatprep.subr.bf16.mxu1 %v2394_v4  ;;  %v2469_v4 = vld [vmem:[#allocation5 + $0x2b0] ss:$8 sps:$4 sm:$0xff]  }
  0x8c   :  { %1136 = vmatpush2.bf16.msra.mxu0 %v2393_v3  ;;  %v2474_v3 = vld [vmem:[#allocation5 + $0x3b4] ss:$8 sps:$4 sm:$0xff]  }
  0x8d   :  { %1191 = vmatprep.subr.bf16.mxu0 %v2399_v8  ;;  %1179 = vmatpush2.bf16.msra.mxu1 %v2396_v6  ;;  %v2477_v6 = vld [vmem:[#allocation5 + $0x2a4] ss:$8 sps:$4 sm:$0xff]  }
  0x8e   :  { %1234 = vmatprep.subr.bf16.mxu1 %v2402_v12  ;;  %v2480_v8 = vld [vmem:[#allocation5 + $0x3a4] ss:$8 sps:$4 sm:$0xff]   ;;  %v2481_v12 = vld [vmem:[#allocation5 + $0x290] ss:$8 sps:$4 sm:$0xff]  }
  0x8f   :  { %1138 = vmatmul.mubr.bf16.vlgmr.msra.gmra.mxu0 %v127_v11  ;;  %v2486_v11 = vld [vmem:[#allocation5 + $0x394] ss:$8 sps:$4 sm:$0xff]  }
  0x90   :  { %1192 = vmatpush1.bf16.msra.mxu0 %v2397_v13  ;;  %1181 = vmatmul.mubr.bf16.vlgmr.msra.gmra.mxu1 %v129_v14  ;;  %v2489_v13 = vld [vmem:[#allocation5 + $0x284] ss:$8 sps:$4 sm:$0xff]   ;;  %v2484_v14 = vld [vmem:[#allocation5 + $0x390] ss:$8 sps:$4 sm:$0xff]  }
  0x91   :  { %1193 = vmatprep.subr.bf16.mxu0 %v2405_v15  ;;  %1235 = vmatpush1.bf16.msra.mxu1 %v2400_v16  ;;  %v2492_v15 = vld [vmem:[#allocation5 + $0x384] ss:$8 sps:$4 sm:$0xff]   ;;  %v2487_v16 = vld [vmem:[#allocation5 + $0x280] ss:$8 sps:$4 sm:$0xff]  }
  0x92   :  { %1236 = vmatprep.subr.bf16.mxu1 %v2408_v17  ;;  %1223 = vmatprep.mubr.bf16.mxu0 %v132_v43  ;;  %v111_v17 = vld [vmem:[#allocation2 + $0x20] sm:$0xff]  ;;  %v2519_v43 = vld [vmem:[#allocation5 + $0x4f4] ss:$8 sps:$4 sm:$0xff]  }
  0x93   :  { %1266 = vmatprep.mubr.bf16.mxu1 %v134_v49  ;;  %v2528_v49 = vld [vmem:[#allocation5 + $0x4c4] ss:$8 sps:$4 sm:$0xff]  }
  0x94   :  { %1194 = vmatpush1.bf16.msra.mxu0 %v2403_v18  ;;  %v121_v18 = vld [vmem:[#allocation2 + $0x70] sm:$0xff] }
  0x95   :  { %1195 = vmatprep.subr.bf16.mxu0 %v2411_v19  ;;  %1237 = vmatpush1.bf16.msra.mxu1 %v2406_v20  ;;  %v2495_v19 = vld [vmem:[#allocation5 + $0x474] ss:$8 sps:$4 sm:$0xff]   ;;  %v116_v20 = vld [vmem:[#allocation2 + $0x48] sm:$0xff] }
  0x96   :  { %1238 = vmatprep.subr.bf16.mxu1 %v2414_v21  ;;  %v126_v21 = vld [vmem:[#allocation2 + $0x98] sm:$0xff] }
  0x98   :  { %1196 = vmatpush1.bf16.msra.mxu0 %v2409_v22  ;;  %v2490_v22 = vld [vmem:[#allocation5 + $0x380] ss:$8 sps:$4 sm:$0xff]  }
  0x99   :  { %1197 = vmatprep.subr.bf16.mxu0 %v2417_v23  ;;  %1239 = vmatpush1.bf16.msra.mxu1 %v2412_v24  ;;  %v113_v23 = vld [vmem:[#allocation2 + $0x30] sm:$0xff]  ;;  %v123_v24 = vld [vmem:[#allocation2 + $0x80] sm:$0xff] }
  0x9a   :  { %1240 = vmatprep.subr.bf16.mxu1 %v2420_v25  ;;  %v2493_v25 = vld [vmem:[#allocation5 + $0x470] ss:$8 sps:$4 sm:$0xff]  }
  0x9c   :  { %1198 = vmatpush1.bf16.msra.mxu0 %v2415_v26  ;;  %v131_v26 = vpack.c.bf16 %v121_v18, %v111_v17 }
  0x9d   :  { %1199 = vmatprep.subr.bf16.mxu0 %v2423_v27  ;;  %1241 = vmatpush1.bf16.msra.mxu1 %v2418_v28  ;;  %v2498_v27 = vld [vmem:[#allocation5 + $0x464] ss:$8 sps:$4 sm:$0xff]   ;;  %v136_v28 = vpack.c.bf16 %v126_v21, %v116_v20 }
  0x9e   :  { %1242 = vmatprep.subr.bf16.mxu1 %v2426_v29  ;;  %v133_v29 = vpack.c.bf16 %v123_v24, %v113_v23  ;;  %v2854_v20 = vld [vmem:[#allocation11] sm:$0xff]  ;;  %v2856_v23 = vld [vmem:[#allocation11 + $0x8] sm:$0xff] }
  0xa0   :  { %1200 = vmatpush1.bf16.msra.mxu0 %v2421_v30  ;;  %v2496_v30 = vld [vmem:[#allocation5 + $0x460] ss:$8 sps:$4 sm:$0xff]  }
  0xa1   :  { %1201 = vmatprep.subr.bf16.mxu0 %v2429_v31  ;;  %1243 = vmatpush1.bf16.msra.mxu1 %v2424_v32  ;;  %v2501_v31 = vld [vmem:[#allocation5 + $0x454] ss:$8 sps:$4 sm:$0xff]   ;;  %v2499_v32 = vld [vmem:[#allocation5 + $0x450] ss:$8 sps:$4 sm:$0xff]  }
  0xa2   :  { %1244 = vmatprep.subr.bf16.mxu1 %v2432_v33  ;;  %v2504_v33 = vld [vmem:[#allocation5 + $0x444] ss:$8 sps:$4 sm:$0xff]  }
  0xa4   :  { %1202 = vmatpush1.bf16.msra.mxu0 %v2427_v34  ;;  %v2502_v34 = vld [vmem:[#allocation5 + $0x440] ss:$8 sps:$4 sm:$0xff]  }
  0xa5   :  { %1203 = vmatprep.subr.bf16.mxu0 %v2435_v35  ;;  %1245 = vmatpush1.bf16.msra.mxu1 %v2430_v36  ;;  %v2507_v35 = vld [vmem:[#allocation5 + $0x434] ss:$8 sps:$4 sm:$0xff]   ;;  %v2505_v36 = vld [vmem:[#allocation5 + $0x430] ss:$8 sps:$4 sm:$0xff]  }
  0xa6   :  { %1246 = vmatprep.subr.bf16.mxu1 %v2438_v37  ;;  %v2510_v37 = vld [vmem:[#allocation5 + $0x424] ss:$8 sps:$4 sm:$0xff]  }
  0xa8   :  { %1204 = vmatpush1.bf16.msra.mxu0 %v2433_v38  ;;  %v2508_v38 = vld [vmem:[#allocation5 + $0x420] ss:$8 sps:$4 sm:$0xff]  }
  0xa9   :  { %1205 = vmatprep.subr.bf16.mxu0 %v2441_v39  ;;  %1247 = vmatpush1.bf16.msra.mxu1 %v2436_v42  ;;  %v2513_v39 = vld [vmem:[#allocation5 + $0x414] ss:$8 sps:$4 sm:$0xff]   ;;  %v2514_v42 = vld [vmem:[#allocation5 + $0x400] ss:$8 sps:$4 sm:$0xff]  }
  0xaa   :  { %1248 = vmatprep.subr.bf16.mxu1 %v2444_v44  ;;  %v2517_v44 = vld [vmem:[#allocation5 + $0x4f0] ss:$8 sps:$4 sm:$0xff]  }
  0xac   :  { %1206 = vmatpush1.bf16.msra.mxu0 %v2439_v46  ;;  %v2520_v46 = vld [vmem:[#allocation5 + $0x4e0] ss:$8 sps:$4 sm:$0xff]  }
  0xad   :  { %1207 = vmatprep.subr.bf16.mxu0 %v2447_v48  ;;  %1249 = vmatpush1.bf16.msra.mxu1 %v2442_v50  ;;  %v2523_v48 = vld [vmem:[#allocation5 + $0x4d0] ss:$8 sps:$4 sm:$0xff]   ;;  %v2526_v50 = vld [vmem:[#allocation5 + $0x4c0] ss:$8 sps:$4 sm:$0xff]  }
  0xae   :  { %1250 = vmatprep.subr.bf16.mxu1 %v2450_v51  ;;  %v2531_v51 = vld [vmem:[#allocation5 + $0x4b4] ss:$8 sps:$4 sm:$0xff]  }
  0xb0   :  { %1208 = vmatpush2.bf16.msra.mxu0 %v2445_v52  ;;  %v2529_v52 = vld [vmem:[#allocation5 + $0x4b0] ss:$8 sps:$4 sm:$0xff]  }
  0xb1   :  { %1209 = vmatprep.subr.bf16.mxu0 %v2453_v53  ;;  %1251 = vmatpush2.bf16.msra.mxu1 %v2448_v54  ;;  %v2534_v53 = vld [vmem:[#allocation5 + $0x4a4] ss:$8 sps:$4 sm:$0xff]   ;;  %v2532_v54 = vld [vmem:[#allocation5 + $0x4a0] ss:$8 sps:$4 sm:$0xff]  }
  0xb2   :  { %1252 = vmatprep.subr.bf16.mxu1 %v2456_v55  ;;  %v2537_v55 = vld [vmem:[#allocation5 + $0x494] ss:$8 sps:$4 sm:$0xff]  }
  0xb4   :  { %1210 = vmatpush2.bf16.msra.mxu0 %v2451_v56  ;;  %v2535_v56 = vld [vmem:[#allocation5 + $0x490] ss:$8 sps:$4 sm:$0xff]  }
  0xb5   :  { %1211 = vmatprep.subr.bf16.mxu0 %v2459_v57  ;;  %1253 = vmatpush2.bf16.msra.mxu1 %v2454_v58  ;;  %v2540_v57 = vld [vmem:[#allocation5 + $0x484] ss:$8 sps:$4 sm:$0xff]   ;;  %v2538_v58 = vld [vmem:[#allocation5 + $0x480] ss:$8 sps:$4 sm:$0xff]  }
  0xb6   :  { %1254 = vmatprep.subr.bf16.mxu1 %v2462_v59  ;;  %v115_v59 = vld [vmem:[#allocation2 + $0x40] sm:$0xff] }
  0xb8   :  { %1212 = vmatpush2.bf16.msra.mxu0 %v2457_v60  ;;  %v125_v60 = vld [vmem:[#allocation2 + $0x90] sm:$0xff] }
  0xb9   :  { %1213 = vmatprep.subr.bf16.mxu0 %v2465_v61  ;;  %1255 = vmatpush2.bf16.msra.mxu1 %v2460_v62  ;;  %v135_v61 = vpack.c.bf16 %v125_v60, %v115_v59  ;;  %v2541_v62 = vld [vmem:[#allocation7 + $0x70] ss:$8 sps:$4 sm:$0xff]  }
  0xba   :  { %1256 = vmatprep.subr.bf16.mxu1 %v2468_v63  ;;  %v2543_v63 = vld [vmem:[#allocation7 + $0x74] ss:$8 sps:$4 sm:$0xff]  }
  0xbc   :  { %1214 = vmatpush2.bf16.msra.mxu0 %v2463_v0  ;;  %v2546_v0 = vld [vmem:[#allocation7 + $0x64] ss:$8 sps:$4 sm:$0xff]  }
  0xbd   :  { %1215 = vmatprep.subr.bf16.mxu0 %v2471_v1  ;;  %1257 = vmatpush2.bf16.msra.mxu1 %v2466_v2  ;;  %v2544_v1 = vld [vmem:[#allocation7 + $0x60] ss:$8 sps:$4 sm:$0xff]   ;;  %v2549_v2 = vld [vmem:[#allocation7 + $0x54] ss:$8 sps:$4 sm:$0xff]  }
  0xbe   :  { %1258 = vmatprep.subr.bf16.mxu1 %v2474_v3  ;;  %v2547_v3 = vld [vmem:[#allocation7 + $0x50] ss:$8 sps:$4 sm:$0xff]  }
  0xc0   :  { %1216 = vmatpush2.bf16.msra.mxu0 %v2469_v4  ;;  %v2552_v4 = vld [vmem:[#allocation7 + $0x44] ss:$8 sps:$4 sm:$0xff]  }
  0xc1   :  { %1217 = vmatprep.subr.bf16.mxu0 %v2477_v6  ;;  %1259 = vmatpush2.bf16.msra.mxu1 %v2472_v5  ;;  %v2550_v5 = vld [vmem:[#allocation7 + $0x40] ss:$8 sps:$4 sm:$0xff]   ;;  %v2555_v6 = vld [vmem:[#allocation7 + $0x34] ss:$8 sps:$4 sm:$0xff]  }
  0xc2   :  { %1260 = vmatprep.subr.bf16.mxu1 %v2480_v8  ;;  %v2558_v8 = vld [vmem:[#allocation7 + $0x24] ss:$8 sps:$4 sm:$0xff]  }
  0xc4   :  { %1218 = vmatpush2.bf16.msra.mxu0 %v2475_v7  ;;  %v2553_v7 = vld [vmem:[#allocation7 + $0x30] ss:$8 sps:$4 sm:$0xff]  }
  0xc5   :  { %1219 = vmatprep.subr.bf16.mxu0 %v2483_v9  ;;  %1261 = vmatpush2.bf16.msra.mxu1 %v2478_v10  ;;  %v2556_v9 = vld [vmem:[#allocation7 + $0x20] ss:$8 sps:$4 sm:$0xff]   ;;  %v2561_v10 = vld [vmem:[#allocation7 + $0x14] ss:$8 sps:$4 sm:$0xff]  }
  0xc6   :  { %1262 = vmatprep.subr.bf16.mxu1 %v2486_v11  ;;  %v2559_v11 = vld [vmem:[#allocation7 + $0x10] ss:$8 sps:$4 sm:$0xff]  }
  0xc8   :  { %1220 = vmatpush2.bf16.msra.mxu0 %v2481_v12 }
  0xc9   :  { %1221 = vmatprep.subr.bf16.mxu0 %v2489_v13  ;;  %1263 = vmatpush2.bf16.msra.mxu1 %v2484_v14  ;;  %v297_v13 = vlaneseq }
  0xca   :  { %1264 = vmatprep.subr.bf16.mxu1 %v2492_v15 }
  0xcc   :  { %1222 = vmatpush2.bf16.msra.mxu0 %v2487_v16  ;;  %v2851_v16 = vshrl.u32 %v297_v13, 7  ;;  %v2579_v13 = vld [vmem:[#allocation7 + $0xb4] ss:$8 sps:$4 sm:$0xff]  }
  0xcd   :  { %1277 = vmatprep.subr.bf16.mxu0 %v2495_v19  ;;  %1265 = vmatpush2.bf16.msra.mxu1 %v2490_v22 }
  0xce   :  { %1586 = vmatprep.subr.bf16.mxu1 %v2543_v63  ;;  %v299_v19 = vsub.s32 0, %v2851_v16 }
  0xcf   :  { %1224 = vmatmul.mubr.bf16.vlgmr.msra.gmra.mxu0 %v131_v26 }
  0xd0   :  { %1278 = vmatpush1.bf16.msra.mxu0 %v2493_v25  ;;  %1309 = vmatprep.mubr.bf16.mxu0 %v136_v28  ;;  %v300_v24 = vrot.slane %v2854_v20, %v299_v19  ;;  %v304_v26 = vrot.slane %v2856_v23, %v299_v19  ;;  %v2583_v19 = vld [vmem:[#allocation7 + $0x90] ss:$8 sps:$4 sm:$0xff]  }
  0xd1   :  { %1267 = vmatmul.mubr.bf16.vlgmr.msra.gmra.mxu1 %v133_v29  ;;  %1279 = vmatprep.subr.bf16.mxu0 %v2498_v27 }
  0xd2   :  { %1587 = vmatpush1.bf16.msra.mxu1 %v2541_v62 }
  0xd3   :  { %1588 = vmatprep.subr.bf16.mxu1 %v2546_v0 }
  0xd4   :  { %1280 = vmatpush1.bf16.msra.mxu0 %v2496_v30 }
  0xd5   :  { %1281 = vmatprep.subr.bf16.mxu0 %v2501_v31 }
  0xd6   :  { %1589 = vmatpush1.bf16.msra.mxu1 %v2544_v1 }
  0xd7   :  { %1590 = vmatprep.subr.bf16.mxu1 %v2549_v2 }
  0xd8   :  { %1282 = vmatpush1.bf16.msra.mxu0 %v2499_v32 }
  0xd9   :  { %1283 = vmatprep.subr.bf16.mxu0 %v2504_v33 }
  0xda   :  { %1591 = vmatpush1.bf16.msra.mxu1 %v2547_v3  ;;  %v2564_v3 = vld [vmem:[#allocation7 + $0x4] ss:$8 sps:$4 sm:$0xff]  }
  0xdb   :  { %1592 = vmatprep.subr.bf16.mxu1 %v2552_v4  ;;  %v2562_v4 = vld [vmem:[#allocation7] ss:$8 sps:$4 sm:$0xff]  }
  0xdc   :  { %1284 = vmatpush1.bf16.msra.mxu0 %v2502_v34 }
  0xdd   :  { %1285 = vmatprep.subr.bf16.mxu0 %v2507_v35 }
  0xde   :  { %1593 = vmatpush1.bf16.msra.mxu1 %v2550_v5  ;;  %v2567_v5 = vld [vmem:[#allocation7 + $0xf4] ss:$8 sps:$4 sm:$0xff]  }
  0xdf   :  { %1594 = vmatprep.subr.bf16.mxu1 %v2555_v6  ;;  %v2565_v6 = vld [vmem:[#allocation7 + $0xf0] ss:$8 sps:$4 sm:$0xff]  }
  0xe0   :  { %1286 = vmatpush1.bf16.msra.mxu0 %v2505_v36 }
  0xe1   :  { %1287 = vmatprep.subr.bf16.mxu0 %v2510_v37 }
  0xe2   :  { %1595 = vmatpush1.bf16.msra.mxu1 %v2553_v7  ;;  %v2570_v7 = vld [vmem:[#allocation7 + $0xe4] ss:$8 sps:$4 sm:$0xff]  }
  0xe3   :  { %1596 = vmatprep.subr.bf16.mxu1 %v2558_v8  ;;  %v2568_v8 = vld [vmem:[#allocation7 + $0xe0] ss:$8 sps:$4 sm:$0xff]  }
  0xe4   :  { %1288 = vmatpush1.bf16.msra.mxu0 %v2508_v38 }
  0xe5   :  { %1289 = vmatprep.subr.bf16.mxu0 %v2513_v39 }
  0xe6   :  { %1597 = vmatpush1.bf16.msra.mxu1 %v2556_v9  ;;  %v2573_v9 = vld [vmem:[#allocation7 + $0xd4] ss:$8 sps:$4 sm:$0xff]  }
  0xe7   :  { %1598 = vmatprep.subr.bf16.mxu1 %v2561_v10  ;;  %v2571_v10 = vld [vmem:[#allocation7 + $0xd0] ss:$8 sps:$4 sm:$0xff]  }
  0xe8   :  { %1290 = vmatpush1.bf16.msra.mxu0 %v2511_v40 }
  0xe9   :  { %1291 = vmatprep.subr.bf16.mxu0 %v2516_v41 }
  0xea   :  { %1599 = vmatpush1.bf16.msra.mxu1 %v2559_v11  ;;  %v2576_v11 = vld [vmem:[#allocation7 + $0xc4] ss:$8 sps:$4 sm:$0xff]  }
  0xeb   :  { %1600 = vmatprep.subr.bf16.mxu1 %v2564_v3 }
  0xec   :  { %1292 = vmatpush1.bf16.msra.mxu0 %v2514_v42 }
  0xed   :  { %1293 = vmatprep.subr.bf16.mxu0 %v2519_v43 }
  0xee   :  { %1601 = vmatpush1.bf16.msra.mxu1 %v2562_v4 }
  0xef   :  { %1602 = vmatprep.subr.bf16.mxu1 %v2567_v5 }
  0xf0   :  { %1294 = vmatpush2.bf16.msra.mxu0 %v2517_v44 }
  0xf1   :  { %1295 = vmatprep.subr.bf16.mxu0 %v2522_v45 }
  0xf2   :  { %1603 = vmatpush2.bf16.msra.mxu1 %v2565_v6 }
  0xf3   :  { %1604 = vmatprep.subr.bf16.mxu1 %v2570_v7 }
  0xf4   :  { %1296 = vmatpush2.bf16.msra.mxu0 %v2520_v46 }
  0xf5   :  { %1297 = vmatprep.subr.bf16.mxu0 %v2525_v47 }
  0xf6   :  { %1605 = vmatpush2.bf16.msra.mxu1 %v2568_v8 }
  0xf7   :  { %1606 = vmatprep.subr.bf16.mxu1 %v2573_v9 }
  0xf8   :  { %1298 = vmatpush2.bf16.msra.mxu0 %v2523_v48 }
  0xf9   :  { %1299 = vmatprep.subr.bf16.mxu0 %v2528_v49 }
  0xfa   :  { %1607 = vmatpush2.bf16.msra.mxu1 %v2571_v10 }
  0xfb   :  { %1608 = vmatprep.subr.bf16.mxu1 %v2576_v11 }
  0xfc   :  { %1300 = vmatpush2.bf16.msra.mxu0 %v2526_v50 }
  0xfd   :  { %1301 = vmatprep.subr.bf16.mxu0 %v2531_v51 }
 0x100   :  { %1302 = vmatpush2.bf16.msra.mxu0 %v2529_v52 }
 0x101   :  { %1303 = vmatprep.subr.bf16.mxu0 %v2534_v53 }
 0x104   :  { %1304 = vmatpush2.bf16.msra.mxu0 %v2532_v54 }
 0x105   :  { %1305 = vmatprep.subr.bf16.mxu0 %v2537_v55 }
 0x108   :  { %1306 = vmatpush2.bf16.msra.mxu0 %v2535_v56 }
 0x109   :  { %1307 = vmatprep.subr.bf16.mxu0 %v2540_v57 }
 0x10c   :  { %1308 = vmatpush2.bf16.msra.mxu0 %v2538_v58 }
 0x10f   :  { %1310 = vmatmul.mubr.bf16.vlgmr.msra.gmra.mxu0 %v135_v61 }
 0x14f   :  { %v1139_v12 = vpop.f32.mrf.mxu0 }
 0x150   :  { %v1182_v15 = vpop.f32.mrf.mxu1  ;;  %v1140_v28 = vadd.f32 %v1139_v12, %v300_v24  ;;  %v2574_v12 = vld [vmem:[#allocation7 + $0xc0] ss:$8 sps:$4 sm:$0xff]  }
 0x151   :  { %v1141_v14 = vpop.f32.mrf.mxu0  ;;  %1609 = vmatpush2.bf16.msra.mxu1 %v2574_v12 }
 0x152   :  { %v1184_v18 = vpop.f32.mrf.mxu1  ;;  %v1142_v31 = vadd.f32 %v1141_v14, %v304_v26  ;;  %v1183_v32 = vadd.f32 %v1182_v15, %v1140_v28  ;;  %v2577_v14 = vld [vmem:[#allocation7 + $0xb0] ss:$8 sps:$4 sm:$0xff]   ;;  %1610 = vmatprep.subr.bf16.mxu1 %v2579_v13  ;;  %v2582_v15 = vld [vmem:[#allocation7 + $0xa4] ss:$8 sps:$4 sm:$0xff]  }
 0x153   :  { %v1143_v17 = vpop.f32.mrf.mxu0 }
 0x154   :  { %v1186_v22 = vpop.f32.mrf.mxu1  ;;  %v1144_v33 = vadd.f32 %v1143_v17, %v300_v24  ;;  %v1185_v37 = vadd.f32 %v1184_v18, %v1142_v31  ;;  %v2580_v17 = vld [vmem:[#allocation7 + $0xa0] ss:$8 sps:$4 sm:$0xff]   ;;  %v2585_v18 = vld [vmem:[#allocation7 + $0x94] ss:$8 sps:$4 sm:$0xff]  }
 0x155   :  { %v1145_v21 = vpop.f32.mrf.mxu0  ;;  %1611 = vmatpush2.bf16.msra.mxu1 %v2577_v14 }
 0x156   :  { %v1188_v27 = vpop.f32.mrf.mxu1  ;;  %v1146_v36 = vadd.f32 %v1145_v21, %v304_v26  ;;  %v1187_v39 = vadd.f32 %v1186_v22, %v1144_v33  ;;  %1612 = vmatprep.subr.bf16.mxu1 %v2582_v15  ;;  %v2588_v21 = vld [vmem:[#allocation7 + $0x84] ss:$8 sps:$4 sm:$0xff]   ;;  %v2586_v22 = vld [vmem:[#allocation7 + $0x80] ss:$8 sps:$4 sm:$0xff]  }
 0x158   :  { %v1189_v43 = vadd.f32 %v1188_v27, %v1146_v36 }
 0x159   :  { %1613 = vmatpush2.bf16.msra.mxu1 %v2580_v17 }
 0x15a   :  { %1614 = vmatprep.subr.bf16.mxu1 %v2585_v18 }
 0x15d   :  { %1615 = vmatpush2.bf16.msra.mxu1 %v2583_v19 }
 0x15e   :  { %1616 = vmatprep.subr.bf16.mxu1 %v2588_v21 }
 0x161   :  { %1617 = vmatpush2.bf16.msra.mxu1 %v2586_v22 }
 0x18f   :  { %v1225_v25 = vpop.f32.mrf.mxu0 }
 0x190   :  { %v1226_v38 = vadd.f32 %v1225_v25, %v1183_v32 }
 0x191   :  { %v1227_v29 = vpop.f32.mrf.mxu0  ;;  %v1268_v30 = vpop.f32.mrf.mxu1 }
 0x192   :  { %v1228_v40 = vadd.f32 %v1227_v29, %v1185_v37  ;;  %v1269_v44 = vadd.f32 %v1268_v30, %v1226_v38  ;;  %v1358_v38 = vsub.s32 1, %v2851_v16 }
 0x193   :  { %v1229_v34 = vpop.f32.mrf.mxu0  ;;  %v1270_v35 = vpop.f32.mrf.mxu1 }
 0x194   :  { %v1230_v45 = vadd.f32 %v1229_v34, %v1187_v39  ;;  %v1271_v48 = vadd.f32 %v1270_v35, %v1228_v40 }
 0x195   :  { %v1231_v41 = vpop.f32.mrf.mxu0  ;;  %v1272_v42 = vpop.f32.mrf.mxu1 }
 0x196   :  { %v1232_v46 = vadd.f32 %v1231_v41, %v1189_v43  ;;  %v1273_v52 = vadd.f32 %v1272_v42, %v1230_v45  ;;  %v1370_v41 = vsub.s32 2, %v2851_v16  ;;  %v1363_v43 = vrot.slane %v2856_v23, %v1358_v38 }
 0x197   :  { %v1274_v49 = vpop.f32.mrf.mxu1 }
 0x198   :  { %v1275_v54 = vadd.f32 %v1274_v49, %v1232_v46 }
 0x1cf   :  { %v1311_v47 = vpop.f32.mrf.mxu0 }
 0x1d0   :  { %v2860_v50 = vadd.f32 %v1311_v47, %v1269_v44  ;;  %v1359_v44 = vrot.slane %v2854_v20, %v1358_v38  ;;  %v1375_v47 = vrot.slane %v2856_v23, %v1370_v41  ;;  %v2601_v38 = vld [vmem:[#allocation8 + $0x48] sm:$0xff]  }
 0x1d1   :  { %v1313_v51 = vpop.f32.mrf.mxu0 }
 0x1d2   :  { %v2862_v53 = vadd.f32 %v1313_v51, %v1271_v48  ;;  %v1326_v58 = vmul.f32 %v2860_v50, %v2860_v50  ;;  %v1371_v48 = vrot.slane %v2854_v20, %v1370_v41  ;;  %v2604_v41 = vld [vmem:[#allocation8] sm:$0xff]  }
 0x1d3   :  { %v1315_v55 = vpop.f32.mrf.mxu0 }
 0x1d4   :  { %v2864_v56 = vadd.f32 %v1315_v55, %v1273_v52  ;;  %v1320_v57 = vadd.f32 %v2862_v53, %v2860_v50  ;;  %v1327_v59 = vmul.f32 %v2862_v53, %v2862_v53 }
 0x1d5   :  { %v1317_v60 = vpop.f32.mrf.mxu0 }
 0x1d6   :  { %v2872_v61 = vadd.f32 %v1317_v60, %v1275_v54  ;;  %1321 = vadd.xlane.f32.xlu0 %v1320_v57  ;;  %v1330_v62 = vadd.f32 %v1327_v59, %v1326_v58  ;;  %v1328_v0 = vmul.f32 %v2864_v56, %v2864_v56 }
 0x1d8   :  { %1331 = vadd.xlane.f32.xlu1 %v1330_v62  ;;  %v1323_v63 = vadd.f32 %v2872_v61, %v2864_v56  ;;  %v1329_v1 = vmul.f32 %v2872_v61, %v2872_v61 }
 0x1da   :  { %1324 = vadd.xlane.f32.xlu0 %v1323_v63  ;;  %v1333_v2 = vadd.f32 %v1329_v1, %v1328_v0 }
 0x1dc   :  { %1334 = vadd.xlane.f32.xlu1 %v1333_v2 }
 0x25f   :  { %v1322_v24 = vpop.xlane.xlu0 %1321 }
 0x260   :  { %v1336_v25 = vmul.f32 0.00390625, %v1322_v24 }
 0x261   :  { %v1332_v26 = vpop.xlane.xlu1 %1331 }
 0x262   :  { %v1338_v27 = vmul.f32 0.00390625, %v1332_v26  ;;  %v1340_v28 = vmul.f32 %v1336_v25, %v1336_v25  ;;  %v1344_v39 = vsub.f32 %v2860_v50, %v1336_v25  ;;  %v1345_v40 = vsub.f32 %v2862_v53, %v1336_v25  ;;  %v2589_v26 = vld [vmem:[#allocation8 + $0x78] sm:$0xff]  }
 0x263   :  { %v1325_v29 = vpop.xlane.xlu0 %1324  ;;  %2235 = vmatprep.subr.bf16.mxu0 %v2589_v26 }
 0x264   :  { %v1342_v30 = vsub.f32 %v1338_v27, %v1340_v28  ;;  %v1337_v31 = vmul.f32 0.00390625, %v1325_v29  ;;  %v2590_v27 = vld [vmem:[#allocation8 + $0x38] sm:$0xff]   ;;  %v2591_v28 = vld [vmem:[#allocation8 + $0x70] sm:$0xff]  }
 0x265   :  { %v1335_v32 = vpop.xlane.xlu1 %1334  ;;  %2236 = vmatpush3.bf16.msra.mxu0 %v2590_v27  ;;  %v2592_v29 = vld [vmem:[#allocation8 + $0x30] sm:$0xff]  }
 0x266   :  { %v1348_v33 = vadd.f32 1e-05, %v1342_v30  ;;  %v1339_v34 = vmul.f32 0.00390625, %v1335_v32  ;;  %v1341_v35 = vmul.f32 %v1337_v31, %v1337_v31  ;;  %v1346_v49 = vsub.f32 %v2864_v56, %v1337_v31  ;;  %2237 = vmatprep.subr.bf16.mxu0 %v2591_v28  ;;  %v2593_v30 = vld [vmem:[#allocation8 + $0x68] sm:$0xff]   ;;  %v2595_v32 = vld [vmem:[#allocation8 + $0x60] sm:$0xff]  }
 0x267   :  { %v1347_v51 = vsub.f32 %v2872_v61, %v1337_v31  ;;  %v1420_v56 = vsub.s32 3, %v2851_v16  ;;  %v2594_v31 = vld [vmem:[#allocation8 + $0x28] sm:$0xff]  }
 0x268   :  { %2613 = vrsqrt.f32 %v1348_v33  ;;  %v1343_v36 = vsub.f32 %v1339_v34, %v1341_v35  ;;  %v2596_v33 = vld [vmem:[#allocation8 + $0x20] sm:$0xff]   ;;  %v2597_v34 = vld [vmem:[#allocation8 + $0x58] sm:$0xff]  }
 0x269   :  { %v1421_v61 = vrot.slane %v2854_v20, %v1420_v56  ;;  %v1425_v6 = vrot.slane %v2856_v23, %v1420_v56  ;;  %2238 = vmatpush3.bf16.msra.mxu0 %v2592_v29  ;;  %v2598_v35 = vld [vmem:[#allocation8 + $0x18] sm:$0xff]  }
 0x26a   :  { %v1349_v37 = vadd.f32 1e-05, %v1343_v36  ;;  %2239 = vmatprep.subr.bf16.mxu0 %v2593_v30  ;;  %v2599_v36 = vld [vmem:[#allocation8 + $0x50] sm:$0xff]  }
 0x26c   :  { %2615 = vrsqrt.f32 %v1349_v37  ;;  %v2600_v37 = vld [vmem:[#allocation8 + $0x10] sm:$0xff]  }
 0x26d   :  { %2240 = vmatpush3.bf16.msra.mxu0 %v2594_v31  ;;  %v2611_v31 = vld [vmem:[#allocation10 + $0x8] sm:$0xff]  }
 0x26e   :  { %2241 = vmatprep.subr.bf16.mxu0 %v2595_v32  ;;  %v2612_v32 = vld [vmem:[#allocation10] sm:$0xff]  }
 0x271   :  { %2242 = vmatpush3.bf16.msra.mxu0 %v2596_v33  ;;  %v1729_v33 = vsub.s32 6, %v2851_v16 }
 0x272   :  { %2243 = vmatprep.subr.bf16.mxu0 %v2597_v34 }
 0x275   :  { %v2614_v42 = vpop.eup %2613  ;;  %2244 = vmatpush3.bf16.msra.mxu0 %v2598_v35 }
 0x276   :  { %v1353_v45 = vmul.f32 %v2614_v42, %v1345_v40  ;;  %v1352_v46 = vmul.f32 %v2614_v42, %v1344_v39  ;;  %2245 = vmatprep.subr.bf16.mxu0 %v2599_v36  ;;  %v2602_v39 = vld [vmem:[#allocation8 + $0x8] sm:$0xff]   ;;  %v2603_v40 = vld [vmem:[#allocation8 + $0x40] sm:$0xff]   ;;  %v2605_v42 = vld [vmem:[#allocation10 + $0x38] sm:$0xff]   ;;  %v1730_v36 = vrot.slane %v2854_v20, %v1729_v33 }
 0x278   :  { %v1365_v50 = vmul.f32 %v1363_v43, %v1353_v45  ;;  %v1364_v52 = vmul.f32 %v1359_v44, %v1352_v46  ;;  %v2607_v45 = vld [vmem:[#allocation10 + $0x28] sm:$0xff]   ;;  %v2608_v46 = vld [vmem:[#allocation10 + $0x20] sm:$0xff]  }
 0x279   :  { %v2616_v53 = vpop.eup %2615  ;;  %2246 = vmatpush3.bf16.msra.mxu0 %v2600_v37 }
 0x27a   :  { %v1355_v54 = vmul.f32 %v2616_v53, %v1347_v51  ;;  %v1354_v55 = vmul.f32 %v2616_v53, %v1346_v49  ;;  %v1377_v58 = vadd.f32 %v1375_v47, %v1365_v50  ;;  %v1376_v60 = vadd.f32 %v1371_v48, %v1364_v52  ;;  %2247 = vmatprep.subr.bf16.mxu0 %v2601_v38 }
 0x27c   :  { %v1367_v57 = vmul.f32 %v1363_v43, %v1355_v54  ;;  %v1366_v59 = vmul.f32 %v1359_v44, %v1354_v55  ;;  %v1381_v0 = vmax.f32 %v1377_v58, 0.0  ;;  %v1380_v2 = vmax.f32 %v1376_v60, 0.0  ;;  %v2606_v44 = vld [vmem:[#allocation10 + $0x30] sm:$0xff]  }
 0x27d   :  { %2248 = vmatpush3.bf16.msra.mxu0 %v2602_v39  ;;  %v2783_v43 = vmov 0.0  }
 0x27e   :  { %v1379_v62 = vadd.f32 %v1375_v47, %v1367_v57  ;;  %v1378_v63 = vadd.f32 %v1371_v48, %v1366_v59  ;;  %2249 = vmatprep.subr.bf16.mxu0 %v2603_v40  ;;  %2266 = vmatprep.subr.bf16.mxu1 %v2783_v43 }
 0x280   :  { %v1383_v1 = vmax.f32 %v1379_v62, 0.0  ;;  %v1382_v3 = vmax.f32 %v1378_v63, 0.0  ;;  %v1667_v63 = vsub.s32 4, %v2851_v16 }
 0x281   :  { %2250 = vmatpush3.bf16.msra.mxu0 %v2604_v41 }
 0x282   :  { %v1385_v4 = vpack.c.bf16 %v1383_v1, %v1381_v0  ;;  %v1384_v5 = vpack.c.bf16 %v1382_v3, %v1380_v2  ;;  %v1679_v0 = vsub.s32 5, %v2851_v16  ;;  %v1672_v3 = vrot.slane %v2856_v23, %v1667_v63 }
 0x284   :  { %1618 = vmatprep.mubr.bf16.mxu1 %v1385_v4  ;;  %v1668_v4 = vrot.slane %v2854_v20, %v1667_v63 }
 0x285   :  { %1619 = vmatmul.mubr.bf16.vlgmr.msra.gmra.mxu1 %v1384_v5 }
 0x286   :  { %2267 = vmatpush3.bf16.msra.mxu1 %v2605_v42  ;;  %2282 = vmatprep.mubr.msk.bf16.mxu1 %vm2784_vm0, %v2783_v43 }
 0x287   :  { %2268 = vmatprep.subr.bf16.mxu1 %v2783_v43 }
 0x28a   :  { %2269 = vmatpush3.bf16.msra.mxu1 %v2606_v44 }
 0x28b   :  { %2270 = vmatprep.subr.bf16.mxu1 %v2783_v43 }
 0x28e   :  { %2271 = vmatpush3.bf16.msra.mxu1 %v2607_v45 }
 0x28f   :  { %2272 = vmatprep.subr.bf16.mxu1 %v2783_v43 }
 0x292   :  { %2273 = vmatpush3.bf16.msra.mxu1 %v2608_v46 }
 0x293   :  { %2274 = vmatprep.subr.bf16.mxu1 %v2783_v43 }
 0x345   :  { %v1620_v7 = vpop.f32.mrf.mxu1 }
 0x346   :  { %v2893_v9 = vadd.f32 %v1620_v7, %v1421_v61  ;;  %v1680_v7 = vrot.slane %v2854_v20, %v1679_v0 }
 0x347   :  { %v1622_v8 = vpop.f32.mrf.mxu1 }
 0x348   :  { %v2895_v10 = vadd.f32 %v1622_v8, %v1425_v6  ;;  %v1635_v18 = vmul.f32 %v2893_v9, %v2893_v9 }
 0x349   :  { %v1624_v11 = vpop.f32.mrf.mxu1 }
 0x34a   :  { %v1629_v12 = vadd.f32 %v2895_v10, %v2893_v9  ;;  %v1636_v13 = vmul.f32 %v2895_v10, %v2895_v10  ;;  %v2901_v15 = vadd.f32 %v1624_v11, %v1421_v61 }
 0x34b   :  { %v1626_v14 = vpop.f32.mrf.mxu1 }
 0x34c   :  { %v2903_v17 = vadd.f32 %v1626_v14, %v1425_v6  ;;  %1630 = vadd.xlane.f32.xlu0 %v1629_v12  ;;  %v1639_v21 = vadd.f32 %v1636_v13, %v1635_v18  ;;  %v1637_v24 = vmul.f32 %v2901_v15, %v2901_v15  ;;  %v1684_v6 = vrot.slane %v2856_v23, %v1679_v0 }
 0x34e   :  { %v1632_v19 = vadd.f32 %v2903_v17, %v2901_v15  ;;  %v1638_v22 = vmul.f32 %v2903_v17, %v2903_v17 }
 0x350   :  { %1633 = vadd.xlane.f32.xlu1 %v1632_v19  ;;  %1640 = vadd.xlane.f32.xlu0 %v1639_v21  ;;  %v1642_v25 = vadd.f32 %v1638_v22, %v1637_v24 }
 0x354   :  { %1643 = vadd.xlane.f32.xlu1 %v1642_v25 }
 0x3d5   :  { %v1631_v47 = vpop.xlane.xlu0 %1630 }
 0x3d6   :  { %v1645_v48 = vmul.f32 0.0052083335, %v1631_v47  ;;  %v1889_v47 = vsub.s32 7, %v2851_v16 }
 0x3d8   :  { %v1649_v52 = vmul.f32 %v1645_v48, %v1645_v48  ;;  %v1653_v1 = vsub.f32 %v2893_v9, %v1645_v48  ;;  %v1654_v2 = vsub.f32 %v2895_v10, %v1645_v48 }
 0x3d9   :  { %v1634_v49 = vpop.xlane.xlu1 %1633  ;;  %v1641_v51 = vpop.xlane.xlu0 %1640 }
 0x3da   :  { %v1646_v50 = vmul.f32 0.0052083335, %v1634_v49  ;;  %v1647_v53 = vmul.f32 0.0052083335, %v1641_v51 }
 0x3dc   :  { %v1651_v54 = vsub.f32 %v1647_v53, %v1649_v52  ;;  %v1650_v58 = vmul.f32 %v1646_v50, %v1646_v50  ;;  %v1655_v8 = vsub.f32 %v2901_v15, %v1646_v50  ;;  %v1656_v11 = vsub.f32 %v2903_v17, %v1646_v50  ;;  %v2609_v15 = vld [vmem:[#allocation10 + $0x18] sm:$0xff]   ;;  %v2610_v17 = vld [vmem:[#allocation10 + $0x10] sm:$0xff]  }
 0x3dd   :  { %v1644_v55 = vpop.xlane.xlu1 %1643  ;;  %2275 = vmatpush3.bf16.msra.mxu1 %v2609_v15 }
 0x3de   :  { %v1657_v57 = vadd.f32 1e-05, %v1651_v54  ;;  %v1648_v59 = vmul.f32 0.0052083335, %v1644_v55  ;;  %2276 = vmatprep.subr.bf16.mxu1 %v2783_v43 }
 0x3e0   :  { %2617 = vrsqrt.f32 %v1657_v57  ;;  %v1652_v60 = vsub.f32 %v1648_v59, %v1650_v58 }
 0x3e1   :  { %2277 = vmatpush3.bf16.msra.mxu1 %v2610_v17 }
 0x3e2   :  { %v1658_v62 = vadd.f32 1e-05, %v1652_v60  ;;  %2278 = vmatprep.subr.bf16.mxu1 %v2783_v43 }
 0x3e4   :  { %2619 = vrsqrt.f32 %v1658_v62 }
 0x3e5   :  { %2279 = vmatpush3.bf16.msra.mxu1 %v2611_v31 }
 0x3e6   :  { %2280 = vmatprep.subr.bf16.mxu1 %v2783_v43  ;;  %v1890_v43 = vrot.slane %v2854_v20, %v1889_v47 }
 0x3e9   :  { %2281 = vmatpush3.bf16.msra.mxu1 %v2612_v32 }
 0x3ed   :  { %v2618_v5 = vpop.eup %2617 }
 0x3ee   :  { %v1662_v56 = vmul.f32 %v2618_v5, %v1654_v2  ;;  %v1661_v61 = vmul.f32 %v2618_v5, %v1653_v1 }
 0x3f0   :  { %v1674_v12 = vmul.f32 %v1672_v3, %v1662_v56  ;;  %v1673_v13 = vmul.f32 %v1668_v4, %v1661_v61 }
 0x3f1   :  { %v2620_v9 = vpop.eup %2619 }
 0x3f2   :  { %v1664_v14 = vmul.f32 %v2620_v9, %v1656_v11  ;;  %v1663_v10 = vmul.f32 %v2620_v9, %v1655_v8  ;;  %v1686_v19 = vadd.f32 %v1684_v6, %v1674_v12  ;;  %v1685_v22 = vadd.f32 %v1680_v7, %v1673_v13 }
 0x3f4   :  { %v1676_v18 = vmul.f32 %v1672_v3, %v1664_v14  ;;  %v1675_v21 = vmul.f32 %v1668_v4, %v1663_v10  ;;  %v1690_v26 = vmax.f32 %v1686_v19, 0.0  ;;  %v1689_v23 = vmax.f32 %v1685_v22, 0.0 }
 0x3f6   :  { %v1688_v24 = vadd.f32 %v1684_v6, %v1676_v18  ;;  %v1687_v25 = vadd.f32 %v1680_v7, %v1675_v21 }
 0x3f8   :  { %v1692_v27 = vmax.f32 %v1688_v24, 0.0  ;;  %v1691_v28 = vmax.f32 %v1687_v25, 0.0 }
 0x3fa   :  { %v1694_v29 = vpack.c.bf16 %v1692_v27, %v1690_v26  ;;  %v1693_v30 = vpack.c.bf16 %v1691_v28, %v1689_v23 }
 0x3fc   :  { %1859 = vmatprep.mubr.bf16.mxu0 %v1694_v29 }
 0x3fd   :  { %1860 = vmatmul.mubr.bf16.vlgmr.msra.gmra.mxu0 %v1693_v30 }
 0x4bd   :  { %v2251_v34 = vpop.f32.mrf.mxu0 }
 0x4bf   :  { %v2252_v35 = vpop.f32.mrf.mxu0 }
 0x4c0   :  { %v2253_v37 = vadd.f32 %v2252_v35, %v2251_v34 }
 0x4c1   :  { %v2254_v38 = vpop.f32.mrf.mxu0 }
 0x4c2   :  { %v1862_v40 = vadd.f32 %v2253_v37, %v1730_v36 }
 0x4c3   :  { %v2255_v39 = vpop.f32.mrf.mxu0 }
 0x4c4   :  { %v2256_v41 = vadd.f32 %v2255_v39, %v2254_v38  ;;  %v1868_v44 = vmax.f32 %v1862_v40, 0.0 }
 0x4c6   :  { %v1865_v42 = vadd.f32 %v2256_v41, %v1730_v36 }
 0x4c8   :  { %v1869_v45 = vmax.f32 %v1865_v42, 0.0 }
 0x4ca   :  { %v1870_v46 = vpack.c.bf16 %v1869_v45, %v1868_v44 }
 0x4cc   :  { %2283 = vmatmul.mubr.bf16.vlgmr.msra.gmra.mxu1 %v1870_v46 }
 0x58c   :  { %v1973_v48 = vpop.f32.mrf.mxu1 }
 0x58d   :  { %v1974_v50 = vadd.f32 %v1973_v48, %v1890_v43 }
 0x58e   :  { %v2284_v49 = vpop.f32.mrf.mxu1 }
 0x590   :  { %v1976_v51 = vpop.f32.mrf.mxu1 }
 0x591   :  { %v1977_v52 = vadd.f32 %v1976_v51, %v1890_v43 }
 0x592   :  { %v2285_v53 = vpop.f32.mrf.mxu1 }
 0x593   :  { %v2233_v54 = vpack.c.bf16 %v1977_v52, %v1974_v50 }
 0x595   :  { %2234 = vst [vmem:[#allocation13] sm:$0xff] %v2233_v54  }
 0x596   :  { %2752 = shalt.err (!%p2749_p6)
}
 0x597   :  { %2001 = dma.vmem_to_hbm [thread:$0]  %s1996_s5, 128, %s2948_s6, [#allocation4], %s2775_s7, %s2775_s7, %s2776_s8  }
 0x598   :  { %2769 = dma.done.wait [#allocation4], 128  }
 0x599   :  { %2770 = vsyncadd [#allocation4], 4294967168 }
 0x59a   :  { %2005 = vsyncpa [#allocation3], 1 }
 0x59b   :  { %2006 = vsyncpa [#allocation6], 1 }
 0x59c   :  { %2007 = vsyncpa [#allocation9], 1 }
 0x59d   :  { %2008 = vsyncpa [#allocation12], 1 }
 0x59e   :  { %2009 = vsyncpa [#allocation4], 1 }

</bundles_post_ra>
